<compile_context>
chip_gen: v5e
topology: v5e:2x2
jax: 0.10.0
libtpu: 0.0.40
codegen_flags: <defaults>
</compile_context>

<pallas_src>
import math
import functools

import jax
import jax.numpy as jnp
from jax.experimental import pallas as pl
from jax.experimental.pallas import tpu as pltpu


def _self_attention_kernel(q_ref, k_ref, v_ref, mask_ref,
                           wq_ref, bq_ref, wk_ref, bk_ref, wv_ref, bv_ref,
                           wr_ref, br_ref, wo_ref, bo_ref,
                           o_ref, x_scr,
                           *, num_heads, head_dim, inv_scale, heads_per_group):
    f32 = jnp.float32
    bf16 = jnp.bfloat16
    Bt, S, H = q_ref.shape
    R = Bt * S

    # ---- Projections: flatten (Bt,S,H) -> (Bt*S,H) so the MXU M-dim is Bt*S rows.
    q2 = q_ref[...].reshape(R, H)      # bf16 activations (cast in the wrapper)
    k2 = k_ref[...].reshape(R, H)
    v2 = v_ref[...].reshape(R, H)

    qp = jnp.dot(q2, wq_ref[...], preferred_element_type=f32) + bq_ref[...]
    kp = jnp.dot(k2, wk_ref[...], preferred_element_type=f32) + bk_ref[...]
    vp = jnp.dot(v2, wv_ref[...], preferred_element_type=f32) + bv_ref[...]
    # r_proj is applied to the *already projected* q, as in the PyTorch module.
    # TODO(synk): wr could be folded through wq on the host (wr_eff = wq @ wr) to break
    # the serial qp->rp MXU dependency; kept separate to match the module numerics.
    rp = jnp.dot(qp.astype(bf16), wr_ref[...], preferred_element_type=f32) + br_ref[...]

    # Full-slab bf16 casts once (per-head slices below come from these), with
    # 1/sqrt(head_dim) folded into q here instead of into the (Bt,S,S) scores.
    q16 = (qp * inv_scale).astype(bf16).reshape(Bt, S, H)
    k16 = kp.astype(bf16).reshape(Bt, S, H)
    v16 = vp.astype(bf16).reshape(Bt, S, H)
    rp3 = rp.reshape(Bt, S, H)                              # gate stays f32

    # Additive mask bias, computed once per block (select hoisted out of the head
    # loop). Finite fill so fully-masked rows give a uniform row instead of NaN
    # (intentional, mirrored in the reference).
    neg_big = jnp.float32(-1e30)
    bias = jnp.where(mask_ref[...].astype(jnp.int32) == 0, neg_big, jnp.float32(0.0))

    # Heads are processed in groups so each scratch-slab write is lane-dense.
    group_w = heads_per_group * head_dim
    for g in range(num_heads // heads_per_group):
        pieces = []
        for hh in range(heads_per_group):
            h = g * heads_per_group + hh
            sl = slice(h * head_dim, (h + 1) * head_dim)
            qh = q16[:, :, sl]                              # (Bt, S, hd) bf16, pre-scaled
            kh = k16[:, :, sl]
            vh = v16[:, :, sl]
            rh = rp3[:, :, sl]                              # f32 gate

            # Batched over the Bt batch chunk on the MXU; f32 accumulation.
            scores = jnp.einsum('bqd,bkd->bqk', qh, kh,
                                preferred_element_type=f32) + bias     # (Bt, S, S)
            m = jnp.max(scores, axis=-1, keepdims=True)
            e = jnp.exp(scores - m)
            denom = jnp.sum(e, axis=-1, keepdims=True)
            probs = e * pl.reciprocal(denom, approx=True)   # EUP reciprocal (free slot)
            # TODO(synk): dropout on attn_probs is treated as identity (eval mode / p = 0).

            xh = jnp.einsum('bqk,bkd->bqd', probs.astype(bf16), vh,
                            preferred_element_type=f32)     # (Bt, S, hd)
            pieces.append((xh * rh).astype(bf16))

        grp = pieces[0] if heads_per_group == 1 else jnp.concatenate(pieces, axis=-1)
        # Lane-dense (128-lane multiple, or full-width) store into the merged slab.
        x_scr[:, g * group_w:(g + 1) * group_w] = grp.reshape(R, group_w)

    # ---- Output projection on the merged heads (one large MXU pass, bf16 in / f32 acc).
    out = jnp.dot(x_scr[...], wo_ref[...], preferred_element_type=f32) + bo_ref[...]
    o_ref[...] = out.reshape(Bt, S, H).astype(o_ref.dtype)


def _vmem_estimate_bytes(block_b, S, H, single_buffer_weights):
    """Rough per-step VMEM footprint (pipeline buffers + weights + live intermediates)."""
    dbl = 2                                            # double-buffered gridded operands
    acts_in = 3 * block_b * S * H * 2 * dbl            # q, k, v (bf16)
    mask_in = block_b * S * S * 1 * dbl                # int8 mask
    out_buf = block_b * S * H * 4 * dbl                # f32 output
    wbuf = 1 if single_buffer_weights else 2
    weights = (5 * H * H * 2 + 5 * H * 4) * wbuf       # bf16 weights + f32 biases
    scratch = block_b * S * H * 2                      # bf16 merged-head slab
    live = (4 * block_b * S * H * 4                    # qp/kp/vp/rp (f32)
            + 3 * block_b * S * H * 2                  # bf16 slabs
            + 4 * block_b * S * S * 4)                 # bias + scores/e/probs (f32)
    return acts_in + mask_in + out_buf + weights + scratch + live


def self_attention_pallas(q, k, v, attn_mask, params, num_heads, *, block_b=None):
    B, S, H = q.shape
    head_dim = H // num_heads
    inv_scale = 1.0 / math.sqrt(head_dim)
    wq, bq, wk, bk, wv, bv, wr, br, wo, bo = params

    # Smallest divisor of num_heads whose store-group width is a 128-lane multiple;
    # otherwise all heads (a full-width write is the densest available).
    heads_per_group = num_heads
    for g in range(1, num_heads + 1):
        if num_heads % g == 0 and (g * head_dim) % 128 == 0:
            heads_per_group = g
            break

    # Batch-chunk size: ~512 projection rows per grid step (fills a 256-wide MXU for
    # two passes), but keep >= 2 grid steps so both v7x TensorCores get work, cap by a
    # VMEM budget, then clamp down to a divisor of B.
    vmem_budget = 40 * 1024 * 1024
    if block_b is None:
        block_b = max(1, min(B, -(-512 // S)))
        if B >= 2:
            block_b = min(block_b, max(1, B // 2))
        while block_b > 1 and _vmem_estimate_bytes(block_b, S, H, True) > vmem_budget:
            block_b -= 1
    while B % block_b:
        block_b -= 1

    bf16 = jnp.bfloat16
    q16, k16, v16 = q.astype(bf16), k.astype(bf16), v.astype(bf16)
    wq16, wk16, wv16, wr16, wo16 = (w.astype(bf16) for w in (wq, wk, wv, wr, wo))
    # TODO(synk): for a structured (e.g. causal) mask, generate it in-kernel from
    # broadcasted_iota instead of DMA-ing (B,S,S) bytes; kept general here.
    mask_i8 = (attn_mask != 0).astype(jnp.int8)            # 4x less mask DMA than f32

    kernel = functools.partial(_self_attention_kernel, num_heads=num_heads,
                               head_dim=head_dim, inv_scale=inv_scale,
                               heads_per_group=heads_per_group)

    grid = (B // block_b,)
    act_spec = pl.BlockSpec((block_b, S, H), lambda b: (b, 0, 0))
    mask_spec = pl.BlockSpec((block_b, S, S), lambda b: (b, 0, 0))
    out_spec = pl.BlockSpec((block_b, S, H), lambda b: (b, 0, 0))

    # Advisory cost estimate so XLA can overlap surrounding ops with the kernel.
    cost = pl.CostEstimate(
        flops=int(2 * B * S * H * (5 * H + 2 * S)),
        transcendentals=int(B * num_heads * S * S),
        bytes_accessed=int(3 * B * S * H * 2 + B * S * S + B * S * H * 4
                           + 5 * H * H * 2 + 5 * H * 4),
    )
    vmem_limit = int(min(64 * 1024 * 1024,
                         max(32 * 1024 * 1024,
                             int(1.25 * _vmem_estimate_bytes(block_b, S, H, True)))))
    cparams = pltpu.CompilerParams(dimension_semantics=("parallel",),
                                   vmem_limit_bytes=vmem_limit)

    def build_and_call(single_buffer_weights):
        if single_buffer_weights:
            # Weights/biases never change block index: a single buffer is enough and
            # halves their VMEM footprint (matters most on v7x's 64 MiB).
            w_opts = dict(pipeline_mode=pl.Buffered(1))
        else:
            w_opts = {}
        w_spec = pl.BlockSpec((H, H), lambda b: (0, 0), **w_opts)
        b_spec = pl.BlockSpec((1, H), lambda b: (0, 0), **w_opts)
        # TODO(synk): for long S / large H, switch the head loop to flash-style KV
        # tiling (online softmax over K/V chunks) so the (Bt,S,S) softmax state fits
        # v7x's 64 MiB VMEM; unnecessary at these shapes.
        return pl.pallas_call(
            kernel,
            out_shape=jax.ShapeDtypeStruct((B, S, H), q.dtype),
            grid=grid,
            in_specs=[act_spec, act_spec, act_spec, mask_spec,
                      w_spec, b_spec, w_spec, b_spec, w_spec, b_spec,
                      w_spec, b_spec, w_spec, b_spec],
            out_specs=out_spec,
            scratch_shapes=[pltpu.VMEM((block_b * S, H), jnp.bfloat16)],
            compiler_params=cparams,
            cost_estimate=cost,
        )(q16, k16, v16, mask_i8,
          wq16, bq, wk16, bk, wv16, bv, wr16, br, wo16, bo)

    try:
        return build_and_call(True)
    except Exception:
        # Fallback if this jax build rejects pipeline_mode=pl.Buffered(1) for
        # top-level pallas_call operands: default double-buffered weights.
        return build_and_call(False)


def self_attention_ref(q, k, v, attn_mask, params, num_heads,
                       *, mirror_kernel_precision=True):
    """Pure-JAX reference mirroring the PyTorch forward.

    With mirror_kernel_precision=True the matmul inputs are rounded to bf16 and the
    mask fill uses the same finite constant as the kernel, so kernel-vs-reference
    differences reduce to accumulation order + the approximate EUP reciprocal."""
    B, S, H = q.shape
    hd = H // num_heads
    inv_scale = 1.0 / math.sqrt(hd)
    wq, bq, wk, bk, wv, bv, wr, br, wo, bo = params

    if mirror_kernel_precision:
        r = lambda x: x.astype(jnp.bfloat16).astype(jnp.float32)
        fill = jnp.float32(-1e30)
    else:
        r = lambda x: x
        fill = -jnp.inf

    dot = lambda a, b: jnp.dot(r(a), r(b), preferred_element_type=jnp.float32)

    qp = dot(q, wq) + bq
    kp = dot(k, wk) + bk
    vp = dot(v, wv) + bv
    rp = dot(qp, wr) + br          # r_proj applied to the projected q, as in PyTorch

    def heads(x):                  # (B,S,H) -> (B,NH,S,hd)
        return x.reshape(B, S, num_heads, hd).transpose(0, 2, 1, 3)

    qh, kh, vh, rh = heads(qp), heads(kp), heads(vp), heads(rp)
    scores = jnp.einsum('bnqd,bnkd->bnqk', r(qh), r(kh),
                        preferred_element_type=jnp.float32) * inv_scale
    scores = jnp.where(attn_mask[:, None, :, :] == 0, fill, scores)
    probs = jax.nn.softmax(scores, axis=-1)
    x = jnp.einsum('bnqk,bnkd->bnqd', r(probs), r(vh),
                   preferred_element_type=jnp.float32)
    x = x * rh
    x = x.transpose(0, 2, 1, 3).reshape(B, S, H)
    return dot(x, wo) + bo


def init_params(key, hidden_size):
    """Deterministic Linear-style init; weights stored pre-transposed as (in, out)."""
    bound = 1.0 / math.sqrt(hidden_size)
    keys = jax.random.split(key, 10)
    params = []
    for i in range(5):  # q, k, v, r, o projections
        w = jax.random.uniform(keys[2 * i], (hidden_size, hidden_size),
                               jnp.float32, -bound, bound)
        b = jax.random.uniform(keys[2 * i + 1], (1, hidden_size),
                               jnp.float32, -bound, bound)
        params.extend([w, b])
    return tuple(params)


if __name__ == "__main__":
    B, S, H, NH = 2, 8, 32, 4   # batch, seq, hidden, num_heads (dropout == 0 / eval)
    key = jax.random.PRNGKey(0)
    kq, kk, kv, kp = jax.random.split(key, 4)

    q = jax.random.normal(kq, (B, S, H), jnp.float32)
    k = jax.random.normal(kk, (B, S, H), jnp.float32)
    v = jax.random.normal(kv, (B, S, H), jnp.float32)
    # Causal mask (1 = keep, 0 = masked), broadcast over heads, shape (B, S, S).
    causal = jnp.tril(jnp.ones((S, S), jnp.float32))
    attn_mask = jnp.broadcast_to(causal, (B, S, S))

    params = init_params(kp, H)

    out = self_attention_pallas(q, k, v, attn_mask, params, NH)
    out = jax.block_until_ready(out)

    ref = self_attention_ref(q, k, v, attn_mask, params, NH)
    assert out.shape == (B, S, H)
    max_err = jnp.max(jnp.abs(out - ref))
    assert jnp.allclose(out, ref, rtol=2e-2, atol=2e-2), f"max abs err {max_err}"

    print("KERNEL_OK")
</pallas_src>

<mosaic_0001>
module attributes {stable_mosaic.version = 11 : i64} {
  func.func @_self_attention_kernel(%arg0: i32, %arg1: memref<1x8x32xbf16, #tpu.memory_space<vmem>>, %arg2: memref<1x8x32xbf16, #tpu.memory_space<vmem>>, %arg3: memref<1x8x32xbf16, #tpu.memory_space<vmem>>, %arg4: memref<1x8x8xi8, #tpu.memory_space<vmem>>, %arg5: memref<32x32xbf16, #tpu.memory_space<vmem>>, %arg6: memref<1x32xf32, #tpu.memory_space<vmem>>, %arg7: memref<32x32xbf16, #tpu.memory_space<vmem>>, %arg8: memref<1x32xf32, #tpu.memory_space<vmem>>, %arg9: memref<32x32xbf16, #tpu.memory_space<vmem>>, %arg10: memref<1x32xf32, #tpu.memory_space<vmem>>, %arg11: memref<32x32xbf16, #tpu.memory_space<vmem>>, %arg12: memref<1x32xf32, #tpu.memory_space<vmem>>, %arg13: memref<32x32xbf16, #tpu.memory_space<vmem>>, %arg14: memref<1x32xf32, #tpu.memory_space<vmem>>, %arg15: memref<1x8x32xf32, #tpu.memory_space<vmem>>, %arg16: memref<8x32xbf16, #tpu.memory_space<vmem>>) attributes {dimension_semantics = [#tpu.dimension_semantics<parallel>], iteration_bounds = array<i64: 2>, scalar_prefetch = 0 : i64, scratch_operands = 1 : i64, tpu.core_type = #tpu.core_type<tc>, window_params = [{transform_indices = @transform_0, window_bounds = array<i64: 1, 8, 32>}, {transform_indices = @transform_1, window_bounds = array<i64: 1, 8, 32>}, {transform_indices = @transform_2, window_bounds = array<i64: 1, 8, 32>}, {transform_indices = @transform_3, window_bounds = array<i64: 1, 8, 8>}, {pipeline_mode = #tpu.pipeline_mode<synchronous>, transform_indices = @transform_4, window_bounds = array<i64: 32, 32>}, {pipeline_mode = #tpu.pipeline_mode<synchronous>, transform_indices = @transform_5, window_bounds = array<i64: 1, 32>}, {pipeline_mode = #tpu.pipeline_mode<synchronous>, transform_indices = @transform_6, window_bounds = array<i64: 32, 32>}, {pipeline_mode = #tpu.pipeline_mode<synchronous>, transform_indices = @transform_7, window_bounds = array<i64: 1, 32>}, {pipeline_mode = #tpu.pipeline_mode<synchronous>, transform_indices = @transform_8, window_bounds = array<i64: 32, 32>}, {pipeline_mode = #tpu.pipeline_mode<synchronous>, transform_indices = @transform_9, window_bounds = array<i64: 1, 32>}, {pipeline_mode = #tpu.pipeline_mode<synchronous>, transform_indices = @transform_10, window_bounds = array<i64: 32, 32>}, {pipeline_mode = #tpu.pipeline_mode<synchronous>, transform_indices = @transform_11, window_bounds = array<i64: 1, 32>}, {pipeline_mode = #tpu.pipeline_mode<synchronous>, transform_indices = @transform_12, window_bounds = array<i64: 32, 32>}, {pipeline_mode = #tpu.pipeline_mode<synchronous>, transform_indices = @transform_13, window_bounds = array<i64: 1, 32>}, {transform_indices = @transform_14, window_bounds = array<i64: 1, 8, 32>}]} {
    %c0 = arith.constant 0 : index
    %c0_0 = arith.constant 0 : index
    %c0_1 = arith.constant 0 : index
    %0 = vector.load %arg1[%c0, %c0_0, %c0_1] : memref<1x8x32xbf16, #tpu.memory_space<vmem>>, vector<1x8x32xbf16>
    %1 = vector.shape_cast %0 : vector<1x8x32xbf16> to vector<8x32xbf16>
    %c0_2 = arith.constant 0 : index
    %c0_3 = arith.constant 0 : index
    %c0_4 = arith.constant 0 : index
    %2 = vector.load %arg2[%c0_2, %c0_3, %c0_4] : memref<1x8x32xbf16, #tpu.memory_space<vmem>>, vector<1x8x32xbf16>
    %3 = vector.shape_cast %2 : vector<1x8x32xbf16> to vector<8x32xbf16>
    %c0_5 = arith.constant 0 : index
    %c0_6 = arith.constant 0 : index
    %c0_7 = arith.constant 0 : index
    %4 = vector.load %arg3[%c0_5, %c0_6, %c0_7] : memref<1x8x32xbf16, #tpu.memory_space<vmem>>, vector<1x8x32xbf16>
    %5 = vector.shape_cast %4 : vector<1x8x32xbf16> to vector<8x32xbf16>
    %c0_8 = arith.constant 0 : index
    %c0_9 = arith.constant 0 : index
    %6 = vector.load %arg5[%c0_8, %c0_9] : memref<32x32xbf16, #tpu.memory_space<vmem>>, vector<32x32xbf16>
    %cst = arith.constant dense<0.000000e+00> : vector<8x32xf32>
    %7 = tpu.matmul %1, %6, %cst {dimension_numbers = #tpu.dot_dimension_numbers<[1], [0], [0], [1], [0, 0, 1, 1], [], []>} : vector<8x32xbf16>, vector<32x32xbf16>, vector<8x32xf32> -> vector<8x32xf32>
    %c0_10 = arith.constant 0 : index
    %c0_11 = arith.constant 0 : index
    %8 = vector.load %arg6[%c0_10, %c0_11] : memref<1x32xf32, #tpu.memory_space<vmem>>, vector<1x32xf32>
    %9 = vector.broadcast %8 : vector<1x32xf32> to vector<8x32xf32>
    %10 = arith.addf %7, %9 : vector<8x32xf32>
    %c0_12 = arith.constant 0 : index
    %c0_13 = arith.constant 0 : index
    %11 = vector.load %arg7[%c0_12, %c0_13] : memref<32x32xbf16, #tpu.memory_space<vmem>>, vector<32x32xbf16>
    %cst_14 = arith.constant dense<0.000000e+00> : vector<8x32xf32>
    %12 = tpu.matmul %3, %11, %cst_14 {dimension_numbers = #tpu.dot_dimension_numbers<[1], [0], [0], [1], [0, 0, 1, 1], [], []>} : vector<8x32xbf16>, vector<32x32xbf16>, vector<8x32xf32> -> vector<8x32xf32>
    %c0_15 = arith.constant 0 : index
    %c0_16 = arith.constant 0 : index
    %13 = vector.load %arg8[%c0_15, %c0_16] : memref<1x32xf32, #tpu.memory_space<vmem>>, vector<1x32xf32>
    %14 = vector.broadcast %13 : vector<1x32xf32> to vector<8x32xf32>
    %15 = arith.addf %12, %14 : vector<8x32xf32>
    %c0_17 = arith.constant 0 : index
    %c0_18 = arith.constant 0 : index
    %16 = vector.load %arg9[%c0_17, %c0_18] : memref<32x32xbf16, #tpu.memory_space<vmem>>, vector<32x32xbf16>
    %cst_19 = arith.constant dense<0.000000e+00> : vector<8x32xf32>
    %17 = tpu.matmul %5, %16, %cst_19 {dimension_numbers = #tpu.dot_dimension_numbers<[1], [0], [0], [1], [0, 0, 1, 1], [], []>} : vector<8x32xbf16>, vector<32x32xbf16>, vector<8x32xf32> -> vector<8x32xf32>
    %c0_20 = arith.constant 0 : index
    %c0_21 = arith.constant 0 : index
    %18 = vector.load %arg10[%c0_20, %c0_21] : memref<1x32xf32, #tpu.memory_space<vmem>>, vector<1x32xf32>
    %19 = vector.broadcast %18 : vector<1x32xf32> to vector<8x32xf32>
    %20 = arith.addf %17, %19 : vector<8x32xf32>
    %21 = arith.truncf %10 : vector<8x32xf32> to vector<8x32xbf16>
    %c0_22 = arith.constant 0 : index
    %c0_23 = arith.constant 0 : index
    %22 = vector.load %arg11[%c0_22, %c0_23] : memref<32x32xbf16, #tpu.memory_space<vmem>>, vector<32x32xbf16>
    %cst_24 = arith.constant dense<0.000000e+00> : vector<8x32xf32>
    %23 = tpu.matmul %21, %22, %cst_24 {dimension_numbers = #tpu.dot_dimension_numbers<[1], [0], [0], [1], [0, 0, 1, 1], [], []>} : vector<8x32xbf16>, vector<32x32xbf16>, vector<8x32xf32> -> vector<8x32xf32>
    %c0_25 = arith.constant 0 : index
    %c0_26 = arith.constant 0 : index
    %24 = vector.load %arg12[%c0_25, %c0_26] : memref<1x32xf32, #tpu.memory_space<vmem>>, vector<1x32xf32>
    %25 = vector.broadcast %24 : vector<1x32xf32> to vector<8x32xf32>
    %26 = arith.addf %23, %25 : vector<8x32xf32>
    %cst_27 = arith.constant 0.353553385 : f32
    %27 = vector.broadcast %cst_27 : f32 to vector<8x32xf32>
    %28 = arith.mulf %10, %27 : vector<8x32xf32>
    %29 = arith.truncf %28 : vector<8x32xf32> to vector<8x32xbf16>
    %30 = vector.shape_cast %29 : vector<8x32xbf16> to vector<1x8x32xbf16>
    %31 = arith.truncf %15 : vector<8x32xf32> to vector<8x32xbf16>
    %32 = vector.shape_cast %31 : vector<8x32xbf16> to vector<1x8x32xbf16>
    %33 = arith.truncf %20 : vector<8x32xf32> to vector<8x32xbf16>
    %34 = vector.shape_cast %33 : vector<8x32xbf16> to vector<1x8x32xbf16>
    %35 = vector.shape_cast %26 : vector<8x32xf32> to vector<1x8x32xf32>
    %c0_28 = arith.constant 0 : index
    %c0_29 = arith.constant 0 : index
    %c0_30 = arith.constant 0 : index
    %36 = vector.load %arg4[%c0_28, %c0_29, %c0_30] : memref<1x8x8xi8, #tpu.memory_space<vmem>>, vector<1x8x8xi8>
    %37 = arith.extsi %36 : vector<1x8x8xi8> to vector<1x8x8xi32>
    %c0_i32 = arith.constant 0 : i32
    %38 = vector.broadcast %c0_i32 : i32 to vector<1x8x8xi32>
    %39 = arith.cmpi eq, %37, %38 : vector<1x8x8xi32>
    %cst_31 = arith.constant -1.000000e+30 : f32
    %cst_32 = arith.constant 0.000000e+00 : f32
    %40 = vector.broadcast %cst_31 : f32 to vector<1x8x8xf32>
    %41 = vector.broadcast %cst_32 : f32 to vector<1x8x8xf32>
    %42 = arith.select %39, %40, %41 : vector<1x8x8xi1>, vector<1x8x8xf32>
    %43 = vector.extract_strided_slice %30 {offsets = [0, 0, 0], sizes = [1, 8, 8], strides = [1, 1, 1]} : vector<1x8x32xbf16> to vector<1x8x8xbf16>
    %44 = vector.extract_strided_slice %32 {offsets = [0, 0, 0], sizes = [1, 8, 8], strides = [1, 1, 1]} : vector<1x8x32xbf16> to vector<1x8x8xbf16>
    %45 = vector.extract_strided_slice %34 {offsets = [0, 0, 0], sizes = [1, 8, 8], strides = [1, 1, 1]} : vector<1x8x32xbf16> to vector<1x8x8xbf16>
    %46 = vector.extract_strided_slice %35 {offsets = [0, 0, 0], sizes = [1, 8, 8], strides = [1, 1, 1]} : vector<1x8x32xf32> to vector<1x8x8xf32>
    "tpu.trace_start"() <{level = 10 : i32, message = "bqd,bkd->bqk"}> : () -> ()
    %cst_33 = arith.constant dense<0.000000e+00> : vector<1x8x8xf32>
    %47 = tpu.matmul %43, %44, %cst_33 {dimension_numbers = #tpu.dot_dimension_numbers<[2], [2], [1], [1], [0, 0, 0, 1, 1, 1], [0], [0]>} : vector<1x8x8xbf16>, vector<1x8x8xbf16>, vector<1x8x8xf32> -> vector<1x8x8xf32>
    "tpu.trace_stop"() : () -> ()
    %48 = arith.addf %47, %42 : vector<1x8x8xf32>
    %cst_34 = arith.constant dense<0xFF800000> : vector<1x8xf32>
    %49 = vector.multi_reduction <maximumf>, %48, %cst_34 [2] : vector<1x8x8xf32> to vector<1x8xf32>
    %50 = vector.shape_cast %49 : vector<1x8xf32> to vector<1x8x1xf32>
    %51 = vector.broadcast %50 : vector<1x8x1xf32> to vector<1x8x8xf32>
    %52 = arith.subf %48, %51 : vector<1x8x8xf32>
    %53 = math.exp %52 : vector<1x8x8xf32>
    %cst_35 = arith.constant dense<0.000000e+00> : vector<1x8xf32>
    %54 = vector.multi_reduction <add>, %53, %cst_35 [2] : vector<1x8x8xf32> to vector<1x8xf32>
    %55 = vector.shape_cast %54 : vector<1x8xf32> to vector<1x8x1xf32>
    %56 = tpu.reciprocal %55 {approx = true} : vector<1x8x1xf32> -> vector<1x8x1xf32>
    %57 = vector.broadcast %56 : vector<1x8x1xf32> to vector<1x8x8xf32>
    %58 = arith.mulf %53, %57 : vector<1x8x8xf32>
    %59 = arith.truncf %58 : vector<1x8x8xf32> to vector<1x8x8xbf16>
    "tpu.trace_start"() <{level = 10 : i32, message = "bqk,bkd->bqd"}> : () -> ()
    %cst_36 = arith.constant dense<0.000000e+00> : vector<1x8x8xf32>
    %60 = tpu.matmul %59, %45, %cst_36 {dimension_numbers = #tpu.dot_dimension_numbers<[2], [1], [1], [2], [0, 0, 0, 1, 1, 2], [0], [0]>} : vector<1x8x8xbf16>, vector<1x8x8xbf16>, vector<1x8x8xf32> -> vector<1x8x8xf32>
    "tpu.trace_stop"() : () -> ()
    %61 = arith.mulf %60, %46 : vector<1x8x8xf32>
    %62 = arith.truncf %61 : vector<1x8x8xf32> to vector<1x8x8xbf16>
    %63 = vector.extract_strided_slice %30 {offsets = [0, 0, 8], sizes = [1, 8, 8], strides = [1, 1, 1]} : vector<1x8x32xbf16> to vector<1x8x8xbf16>
    %64 = vector.extract_strided_slice %32 {offsets = [0, 0, 8], sizes = [1, 8, 8], strides = [1, 1, 1]} : vector<1x8x32xbf16> to vector<1x8x8xbf16>
    %65 = vector.extract_strided_slice %34 {offsets = [0, 0, 8], sizes = [1, 8, 8], strides = [1, 1, 1]} : vector<1x8x32xbf16> to vector<1x8x8xbf16>
    %66 = vector.extract_strided_slice %35 {offsets = [0, 0, 8], sizes = [1, 8, 8], strides = [1, 1, 1]} : vector<1x8x32xf32> to vector<1x8x8xf32>
    "tpu.trace_start"() <{level = 10 : i32, message = "bqd,bkd->bqk"}> : () -> ()
    %cst_37 = arith.constant dense<0.000000e+00> : vector<1x8x8xf32>
    %67 = tpu.matmul %63, %64, %cst_37 {dimension_numbers = #tpu.dot_dimension_numbers<[2], [2], [1], [1], [0, 0, 0, 1, 1, 1], [0], [0]>} : vector<1x8x8xbf16>, vector<1x8x8xbf16>, vector<1x8x8xf32> -> vector<1x8x8xf32>
    "tpu.trace_stop"() : () -> ()
    %68 = arith.addf %67, %42 : vector<1x8x8xf32>
    %cst_38 = arith.constant dense<0xFF800000> : vector<1x8xf32>
    %69 = vector.multi_reduction <maximumf>, %68, %cst_38 [2] : vector<1x8x8xf32> to vector<1x8xf32>
    %70 = vector.shape_cast %69 : vector<1x8xf32> to vector<1x8x1xf32>
    %71 = vector.broadcast %70 : vector<1x8x1xf32> to vector<1x8x8xf32>
    %72 = arith.subf %68, %71 : vector<1x8x8xf32>
    %73 = math.exp %72 : vector<1x8x8xf32>
    %cst_39 = arith.constant dense<0.000000e+00> : vector<1x8xf32>
    %74 = vector.multi_reduction <add>, %73, %cst_39 [2] : vector<1x8x8xf32> to vector<1x8xf32>
    %75 = vector.shape_cast %74 : vector<1x8xf32> to vector<1x8x1xf32>
    %76 = tpu.reciprocal %75 {approx = true} : vector<1x8x1xf32> -> vector<1x8x1xf32>
    %77 = vector.broadcast %76 : vector<1x8x1xf32> to vector<1x8x8xf32>
    %78 = arith.mulf %73, %77 : vector<1x8x8xf32>
    %79 = arith.truncf %78 : vector<1x8x8xf32> to vector<1x8x8xbf16>
    "tpu.trace_start"() <{level = 10 : i32, message = "bqk,bkd->bqd"}> : () -> ()
    %cst_40 = arith.constant dense<0.000000e+00> : vector<1x8x8xf32>
    %80 = tpu.matmul %79, %65, %cst_40 {dimension_numbers = #tpu.dot_dimension_numbers<[2], [1], [1], [2], [0, 0, 0, 1, 1, 2], [0], [0]>} : vector<1x8x8xbf16>, vector<1x8x8xbf16>, vector<1x8x8xf32> -> vector<1x8x8xf32>
    "tpu.trace_stop"() : () -> ()
    %81 = arith.mulf %80, %66 : vector<1x8x8xf32>
    %82 = arith.truncf %81 : vector<1x8x8xf32> to vector<1x8x8xbf16>
    %83 = vector.extract_strided_slice %30 {offsets = [0, 0, 16], sizes = [1, 8, 8], strides = [1, 1, 1]} : vector<1x8x32xbf16> to vector<1x8x8xbf16>
    %84 = vector.extract_strided_slice %32 {offsets = [0, 0, 16], sizes = [1, 8, 8], strides = [1, 1, 1]} : vector<1x8x32xbf16> to vector<1x8x8xbf16>
    %85 = vector.extract_strided_slice %34 {offsets = [0, 0, 16], sizes = [1, 8, 8], strides = [1, 1, 1]} : vector<1x8x32xbf16> to vector<1x8x8xbf16>
    %86 = vector.extract_strided_slice %35 {offsets = [0, 0, 16], sizes = [1, 8, 8], strides = [1, 1, 1]} : vector<1x8x32xf32> to vector<1x8x8xf32>
    "tpu.trace_start"() <{level = 10 : i32, message = "bqd,bkd->bqk"}> : () -> ()
    %cst_41 = arith.constant dense<0.000000e+00> : vector<1x8x8xf32>
    %87 = tpu.matmul %83, %84, %cst_41 {dimension_numbers = #tpu.dot_dimension_numbers<[2], [2], [1], [1], [0, 0, 0, 1, 1, 1], [0], [0]>} : vector<1x8x8xbf16>, vector<1x8x8xbf16>, vector<1x8x8xf32> -> vector<1x8x8xf32>
    "tpu.trace_stop"() : () -> ()
    %88 = arith.addf %87, %42 : vector<1x8x8xf32>
    %cst_42 = arith.constant dense<0xFF800000> : vector<1x8xf32>
    %89 = vector.multi_reduction <maximumf>, %88, %cst_42 [2] : vector<1x8x8xf32> to vector<1x8xf32>
    %90 = vector.shape_cast %89 : vector<1x8xf32> to vector<1x8x1xf32>
    %91 = vector.broadcast %90 : vector<1x8x1xf32> to vector<1x8x8xf32>
    %92 = arith.subf %88, %91 : vector<1x8x8xf32>
    %93 = math.exp %92 : vector<1x8x8xf32>
    %cst_43 = arith.constant dense<0.000000e+00> : vector<1x8xf32>
    %94 = vector.multi_reduction <add>, %93, %cst_43 [2] : vector<1x8x8xf32> to vector<1x8xf32>
    %95 = vector.shape_cast %94 : vector<1x8xf32> to vector<1x8x1xf32>
    %96 = tpu.reciprocal %95 {approx = true} : vector<1x8x1xf32> -> vector<1x8x1xf32>
    %97 = vector.broadcast %96 : vector<1x8x1xf32> to vector<1x8x8xf32>
    %98 = arith.mulf %93, %97 : vector<1x8x8xf32>
    %99 = arith.truncf %98 : vector<1x8x8xf32> to vector<1x8x8xbf16>
    "tpu.trace_start"() <{level = 10 : i32, message = "bqk,bkd->bqd"}> : () -> ()
    %cst_44 = arith.constant dense<0.000000e+00> : vector<1x8x8xf32>
    %100 = tpu.matmul %99, %85, %cst_44 {dimension_numbers = #tpu.dot_dimension_numbers<[2], [1], [1], [2], [0, 0, 0, 1, 1, 2], [0], [0]>} : vector<1x8x8xbf16>, vector<1x8x8xbf16>, vector<1x8x8xf32> -> vector<1x8x8xf32>
    "tpu.trace_stop"() : () -> ()
    %101 = arith.mulf %100, %86 : vector<1x8x8xf32>
    %102 = arith.truncf %101 : vector<1x8x8xf32> to vector<1x8x8xbf16>
    %103 = vector.extract_strided_slice %30 {offsets = [0, 0, 24], sizes = [1, 8, 8], strides = [1, 1, 1]} : vector<1x8x32xbf16> to vector<1x8x8xbf16>
    %104 = vector.extract_strided_slice %32 {offsets = [0, 0, 24], sizes = [1, 8, 8], strides = [1, 1, 1]} : vector<1x8x32xbf16> to vector<1x8x8xbf16>
    %105 = vector.extract_strided_slice %34 {offsets = [0, 0, 24], sizes = [1, 8, 8], strides = [1, 1, 1]} : vector<1x8x32xbf16> to vector<1x8x8xbf16>
    %106 = vector.extract_strided_slice %35 {offsets = [0, 0, 24], sizes = [1, 8, 8], strides = [1, 1, 1]} : vector<1x8x32xf32> to vector<1x8x8xf32>
    "tpu.trace_start"() <{level = 10 : i32, message = "bqd,bkd->bqk"}> : () -> ()
    %cst_45 = arith.constant dense<0.000000e+00> : vector<1x8x8xf32>
    %107 = tpu.matmul %103, %104, %cst_45 {dimension_numbers = #tpu.dot_dimension_numbers<[2], [2], [1], [1], [0, 0, 0, 1, 1, 1], [0], [0]>} : vector<1x8x8xbf16>, vector<1x8x8xbf16>, vector<1x8x8xf32> -> vector<1x8x8xf32>
    "tpu.trace_stop"() : () -> ()
    %108 = arith.addf %107, %42 : vector<1x8x8xf32>
    %cst_46 = arith.constant dense<0xFF800000> : vector<1x8xf32>
    %109 = vector.multi_reduction <maximumf>, %108, %cst_46 [2] : vector<1x8x8xf32> to vector<1x8xf32>
    %110 = vector.shape_cast %109 : vector<1x8xf32> to vector<1x8x1xf32>
    %111 = vector.broadcast %110 : vector<1x8x1xf32> to vector<1x8x8xf32>
    %112 = arith.subf %108, %111 : vector<1x8x8xf32>
    %113 = math.exp %112 : vector<1x8x8xf32>
    %cst_47 = arith.constant dense<0.000000e+00> : vector<1x8xf32>
    %114 = vector.multi_reduction <add>, %113, %cst_47 [2] : vector<1x8x8xf32> to vector<1x8xf32>
    %115 = vector.shape_cast %114 : vector<1x8xf32> to vector<1x8x1xf32>
    %116 = tpu.reciprocal %115 {approx = true} : vector<1x8x1xf32> -> vector<1x8x1xf32>
    %117 = vector.broadcast %116 : vector<1x8x1xf32> to vector<1x8x8xf32>
    %118 = arith.mulf %113, %117 : vector<1x8x8xf32>
    %119 = arith.truncf %118 : vector<1x8x8xf32> to vector<1x8x8xbf16>
    "tpu.trace_start"() <{level = 10 : i32, message = "bqk,bkd->bqd"}> : () -> ()
    %cst_48 = arith.constant dense<0.000000e+00> : vector<1x8x8xf32>
    %120 = tpu.matmul %119, %105, %cst_48 {dimension_numbers = #tpu.dot_dimension_numbers<[2], [1], [1], [2], [0, 0, 0, 1, 1, 2], [0], [0]>} : vector<1x8x8xbf16>, vector<1x8x8xbf16>, vector<1x8x8xf32> -> vector<1x8x8xf32>
    "tpu.trace_stop"() : () -> ()
    %121 = arith.mulf %120, %106 : vector<1x8x8xf32>
    %122 = arith.truncf %121 : vector<1x8x8xf32> to vector<1x8x8xbf16>
    %123 = tpu.concatenate %62, %82, %102, %122 in 2 : vector<1x8x8xbf16>, vector<1x8x8xbf16>, vector<1x8x8xbf16>, vector<1x8x8xbf16> -> vector<1x8x32xbf16>
    %124 = vector.shape_cast %123 : vector<1x8x32xbf16> to vector<8x32xbf16>
    %c0_49 = arith.constant 0 : index
    %c0_50 = arith.constant 0 : index
    %125 = vector.load %arg16[%c0_49, %c0_50] : memref<8x32xbf16, #tpu.memory_space<vmem>>, vector<8x32xbf16>
    tpu.vector_store %arg16[%c0_49, %c0_50], %124 {strides = array<i32>} : memref<8x32xbf16, #tpu.memory_space<vmem>>, vector<8x32xbf16>,
    %c0_51 = arith.constant 0 : index
    %c0_52 = arith.constant 0 : index
    %126 = vector.load %arg16[%c0_51, %c0_52] : memref<8x32xbf16, #tpu.memory_space<vmem>>, vector<8x32xbf16>
    %c0_53 = arith.constant 0 : index
    %c0_54 = arith.constant 0 : index
    %127 = vector.load %arg13[%c0_53, %c0_54] : memref<32x32xbf16, #tpu.memory_space<vmem>>, vector<32x32xbf16>
    %cst_55 = arith.constant dense<0.000000e+00> : vector<8x32xf32>
    %128 = tpu.matmul %126, %127, %cst_55 {dimension_numbers = #tpu.dot_dimension_numbers<[1], [0], [0], [1], [0, 0, 1, 1], [], []>} : vector<8x32xbf16>, vector<32x32xbf16>, vector<8x32xf32> -> vector<8x32xf32>
    %c0_56 = arith.constant 0 : index
    %c0_57 = arith.constant 0 : index
    %129 = vector.load %arg14[%c0_56, %c0_57] : memref<1x32xf32, #tpu.memory_space<vmem>>, vector<1x32xf32>
    %130 = vector.broadcast %129 : vector<1x32xf32> to vector<8x32xf32>
    %131 = arith.addf %128, %130 : vector<8x32xf32>
    %132 = vector.shape_cast %131 : vector<8x32xf32> to vector<1x8x32xf32>
    %c0_58 = arith.constant 0 : index
    %c0_59 = arith.constant 0 : index
    %c0_60 = arith.constant 0 : index
    %133 = vector.load %arg15[%c0_58, %c0_59, %c0_60] : memref<1x8x32xf32, #tpu.memory_space<vmem>>, vector<1x8x32xf32>
    tpu.vector_store %arg15[%c0_58, %c0_59, %c0_60], %132 {strides = array<i32>} : memref<1x8x32xf32, #tpu.memory_space<vmem>>, vector<1x8x32xf32>,
    return
  }
  func.func @transform_0(%arg0: i32) -> (i32, i32, i32) {
    %c0_i32 = arith.constant 0 : i32
    %c0_i32_0 = arith.constant 0 : i32
    %c0_i32_1 = arith.constant 0 : i32
    return %arg0, %c0_i32, %c0_i32_0 : i32, i32, i32
  }
  func.func @transform_1(%arg0: i32) -> (i32, i32, i32) {
    %c0_i32 = arith.constant 0 : i32
    %c0_i32_0 = arith.constant 0 : i32
    %c0_i32_1 = arith.constant 0 : i32
    return %arg0, %c0_i32, %c0_i32_0 : i32, i32, i32
  }
  func.func @transform_2(%arg0: i32) -> (i32, i32, i32) {
    %c0_i32 = arith.constant 0 : i32
    %c0_i32_0 = arith.constant 0 : i32
    %c0_i32_1 = arith.constant 0 : i32
    return %arg0, %c0_i32, %c0_i32_0 : i32, i32, i32
  }
  func.func @transform_3(%arg0: i32) -> (i32, i32, i32) {
    %c0_i32 = arith.constant 0 : i32
    %c0_i32_0 = arith.constant 0 : i32
    %c0_i32_1 = arith.constant 0 : i32
    return %arg0, %c0_i32, %c0_i32_0 : i32, i32, i32
  }
  func.func @transform_4(%arg0: i32) -> (i32, i32) {
    %c0_i32 = arith.constant 0 : i32
    %c0_i32_0 = arith.constant 0 : i32
    %c0_i32_1 = arith.constant 0 : i32
    return %c0_i32, %c0_i32_0 : i32, i32
  }
  func.func @transform_5(%arg0: i32) -> (i32, i32) {
    %c0_i32 = arith.constant 0 : i32
    %c0_i32_0 = arith.constant 0 : i32
    %c0_i32_1 = arith.constant 0 : i32
    return %c0_i32, %c0_i32_0 : i32, i32
  }
  func.func @transform_6(%arg0: i32) -> (i32, i32) {
    %c0_i32 = arith.constant 0 : i32
    %c0_i32_0 = arith.constant 0 : i32
    %c0_i32_1 = arith.constant 0 : i32
    return %c0_i32, %c0_i32_0 : i32, i32
  }
  func.func @transform_7(%arg0: i32) -> (i32, i32) {
    %c0_i32 = arith.constant 0 : i32
    %c0_i32_0 = arith.constant 0 : i32
    %c0_i32_1 = arith.constant 0 : i32
    return %c0_i32, %c0_i32_0 : i32, i32
  }
  func.func @transform_8(%arg0: i32) -> (i32, i32) {
    %c0_i32 = arith.constant 0 : i32
    %c0_i32_0 = arith.constant 0 : i32
    %c0_i32_1 = arith.constant 0 : i32
    return %c0_i32, %c0_i32_0 : i32, i32
  }
  func.func @transform_9(%arg0: i32) -> (i32, i32) {
    %c0_i32 = arith.constant 0 : i32
    %c0_i32_0 = arith.constant 0 : i32
    %c0_i32_1 = arith.constant 0 : i32
    return %c0_i32, %c0_i32_0 : i32, i32
  }
  func.func @transform_10(%arg0: i32) -> (i32, i32) {
    %c0_i32 = arith.constant 0 : i32
    %c0_i32_0 = arith.constant 0 : i32
    %c0_i32_1 = arith.constant 0 : i32
    return %c0_i32, %c0_i32_0 : i32, i32
  }
  func.func @transform_11(%arg0: i32) -> (i32, i32) {
    %c0_i32 = arith.constant 0 : i32
    %c0_i32_0 = arith.constant 0 : i32
    %c0_i32_1 = arith.constant 0 : i32
    return %c0_i32, %c0_i32_0 : i32, i32
  }
  func.func @transform_12(%arg0: i32) -> (i32, i32) {
    %c0_i32 = arith.constant 0 : i32
    %c0_i32_0 = arith.constant 0 : i32
    %c0_i32_1 = arith.constant 0 : i32
    return %c0_i32, %c0_i32_0 : i32, i32
  }
  func.func @transform_13(%arg0: i32) -> (i32, i32) {
    %c0_i32 = arith.constant 0 : i32
    %c0_i32_0 = arith.constant 0 : i32
    %c0_i32_1 = arith.constant 0 : i32
    return %c0_i32, %c0_i32_0 : i32, i32
  }
  func.func @transform_14(%arg0: i32) -> (i32, i32, i32) {
    %c0_i32 = arith.constant 0 : i32
    %c0_i32_0 = arith.constant 0 : i32
    %c0_i32_1 = arith.constant 0 : i32
    return %arg0, %c0_i32, %c0_i32_0 : i32, i32, i32
  }
}

module attributes {stable_mosaic.version = 11 : i64} {
  func.func @_self_attention_kernel(%arg0: i32, %arg1: memref<1x8x32xbf16, #tpu.memory_space<vmem>>, %arg2: memref<1x8x32xbf16, #tpu.memory_space<vmem>>, %arg3: memref<1x8x32xbf16, #tpu.memory_space<vmem>>, %arg4: memref<1x8x8xi8, #tpu.memory_space<vmem>>, %arg5: memref<32x32xbf16, #tpu.memory_space<vmem>>, %arg6: memref<1x32xf32, #tpu.memory_space<vmem>>, %arg7: memref<32x32xbf16, #tpu.memory_space<vmem>>, %arg8: memref<1x32xf32, #tpu.memory_space<vmem>>, %arg9: memref<32x32xbf16, #tpu.memory_space<vmem>>, %arg10: memref<1x32xf32, #tpu.memory_space<vmem>>, %arg11: memref<32x32xbf16, #tpu.memory_space<vmem>>, %arg12: memref<1x32xf32, #tpu.memory_space<vmem>>, %arg13: memref<32x32xbf16, #tpu.memory_space<vmem>>, %arg14: memref<1x32xf32, #tpu.memory_space<vmem>>, %arg15: memref<1x8x32xf32, #tpu.memory_space<vmem>>, %arg16: memref<8x32xbf16, #tpu.memory_space<vmem>>) attributes {dimension_semantics = [#tpu.dimension_semantics<parallel>], iteration_bounds = array<i64: 2>, scalar_prefetch = 0 : i64, scratch_operands = 1 : i64, tpu.core_type = #tpu.core_type<tc>, window_params = [{transform_indices = @transform_0, window_bounds = array<i64: 1, 8, 32>}, {transform_indices = @transform_1, window_bounds = array<i64: 1, 8, 32>}, {transform_indices = @transform_2, window_bounds = array<i64: 1, 8, 32>}, {transform_indices = @transform_3, window_bounds = array<i64: 1, 8, 8>}, {pipeline_mode = #tpu.pipeline_mode<synchronous>, transform_indices = @transform_4, window_bounds = array<i64: 32, 32>}, {pipeline_mode = #tpu.pipeline_mode<synchronous>, transform_indices = @transform_5, window_bounds = array<i64: 1, 32>}, {pipeline_mode = #tpu.pipeline_mode<synchronous>, transform_indices = @transform_6, window_bounds = array<i64: 32, 32>}, {pipeline_mode = #tpu.pipeline_mode<synchronous>, transform_indices = @transform_7, window_bounds = array<i64: 1, 32>}, {pipeline_mode = #tpu.pipeline_mode<synchronous>, transform_indices = @transform_8, window_bounds = array<i64: 32, 32>}, {pipeline_mode = #tpu.pipeline_mode<synchronous>, transform_indices = @transform_9, window_bounds = array<i64: 1, 32>}, {pipeline_mode = #tpu.pipeline_mode<synchronous>, transform_indices = @transform_10, window_bounds = array<i64: 32, 32>}, {pipeline_mode = #tpu.pipeline_mode<synchronous>, transform_indices = @transform_11, window_bounds = array<i64: 1, 32>}, {pipeline_mode = #tpu.pipeline_mode<synchronous>, transform_indices = @transform_12, window_bounds = array<i64: 32, 32>}, {pipeline_mode = #tpu.pipeline_mode<synchronous>, transform_indices = @transform_13, window_bounds = array<i64: 1, 32>}, {transform_indices = @transform_14, window_bounds = array<i64: 1, 8, 32>}]} {
    %c0 = arith.constant 0 : index
    %c0_0 = arith.constant 0 : index
    %c0_1 = arith.constant 0 : index
    %0 = vector.load %arg1[%c0, %c0_0, %c0_1] : memref<1x8x32xbf16, #tpu.memory_space<vmem>>, vector<1x8x32xbf16>
    %1 = vector.shape_cast %0 : vector<1x8x32xbf16> to vector<8x32xbf16>
    %c0_2 = arith.constant 0 : index
    %c0_3 = arith.constant 0 : index
    %c0_4 = arith.constant 0 : index
    %2 = vector.load %arg2[%c0_2, %c0_3, %c0_4] : memref<1x8x32xbf16, #tpu.memory_space<vmem>>, vector<1x8x32xbf16>
    %3 = vector.shape_cast %2 : vector<1x8x32xbf16> to vector<8x32xbf16>
    %c0_5 = arith.constant 0 : index
    %c0_6 = arith.constant 0 : index
    %c0_7 = arith.constant 0 : index
    %4 = vector.load %arg3[%c0_5, %c0_6, %c0_7] : memref<1x8x32xbf16, #tpu.memory_space<vmem>>, vector<1x8x32xbf16>
    %5 = vector.shape_cast %4 : vector<1x8x32xbf16> to vector<8x32xbf16>
    %c0_8 = arith.constant 0 : index
    %c0_9 = arith.constant 0 : index
    %6 = vector.load %arg5[%c0_8, %c0_9] : memref<32x32xbf16, #tpu.memory_space<vmem>>, vector<32x32xbf16>
    %cst = arith.constant dense<0.000000e+00> : vector<8x32xf32>
    %7 = tpu.matmul %1, %6, %cst {dimension_numbers = #tpu.dot_dimension_numbers<[1], [0], [0], [1], [0, 0, 1, 1], [], []>} : vector<8x32xbf16>, vector<32x32xbf16>, vector<8x32xf32> -> vector<8x32xf32>
    %c0_10 = arith.constant 0 : index
    %c0_11 = arith.constant 0 : index
    %8 = vector.load %arg6[%c0_10, %c0_11] : memref<1x32xf32, #tpu.memory_space<vmem>>, vector<1x32xf32>
    %9 = vector.broadcast %8 : vector<1x32xf32> to vector<8x32xf32>
    %10 = arith.addf %7, %9 : vector<8x32xf32>
    %c0_12 = arith.constant 0 : index
    %c0_13 = arith.constant 0 : index
    %11 = vector.load %arg7[%c0_12, %c0_13] : memref<32x32xbf16, #tpu.memory_space<vmem>>, vector<32x32xbf16>
    %cst_14 = arith.constant dense<0.000000e+00> : vector<8x32xf32>
    %12 = tpu.matmul %3, %11, %cst_14 {dimension_numbers = #tpu.dot_dimension_numbers<[1], [0], [0], [1], [0, 0, 1, 1], [], []>} : vector<8x32xbf16>, vector<32x32xbf16>, vector<8x32xf32> -> vector<8x32xf32>
    %c0_15 = arith.constant 0 : index
    %c0_16 = arith.constant 0 : index
    %13 = vector.load %arg8[%c0_15, %c0_16] : memref<1x32xf32, #tpu.memory_space<vmem>>, vector<1x32xf32>
    %14 = vector.broadcast %13 : vector<1x32xf32> to vector<8x32xf32>
    %15 = arith.addf %12, %14 : vector<8x32xf32>
    %c0_17 = arith.constant 0 : index
    %c0_18 = arith.constant 0 : index
    %16 = vector.load %arg9[%c0_17, %c0_18] : memref<32x32xbf16, #tpu.memory_space<vmem>>, vector<32x32xbf16>
    %cst_19 = arith.constant dense<0.000000e+00> : vector<8x32xf32>
    %17 = tpu.matmul %5, %16, %cst_19 {dimension_numbers = #tpu.dot_dimension_numbers<[1], [0], [0], [1], [0, 0, 1, 1], [], []>} : vector<8x32xbf16>, vector<32x32xbf16>, vector<8x32xf32> -> vector<8x32xf32>
    %c0_20 = arith.constant 0 : index
    %c0_21 = arith.constant 0 : index
    %18 = vector.load %arg10[%c0_20, %c0_21] : memref<1x32xf32, #tpu.memory_space<vmem>>, vector<1x32xf32>
    %19 = vector.broadcast %18 : vector<1x32xf32> to vector<8x32xf32>
    %20 = arith.addf %17, %19 : vector<8x32xf32>
    %21 = arith.truncf %10 : vector<8x32xf32> to vector<8x32xbf16>
    %c0_22 = arith.constant 0 : index
    %c0_23 = arith.constant 0 : index
    %22 = vector.load %arg11[%c0_22, %c0_23] : memref<32x32xbf16, #tpu.memory_space<vmem>>, vector<32x32xbf16>
    %cst_24 = arith.constant dense<0.000000e+00> : vector<8x32xf32>
    %23 = tpu.matmul %21, %22, %cst_24 {dimension_numbers = #tpu.dot_dimension_numbers<[1], [0], [0], [1], [0, 0, 1, 1], [], []>} : vector<8x32xbf16>, vector<32x32xbf16>, vector<8x32xf32> -> vector<8x32xf32>
    %c0_25 = arith.constant 0 : index
    %c0_26 = arith.constant 0 : index
    %24 = vector.load %arg12[%c0_25, %c0_26] : memref<1x32xf32, #tpu.memory_space<vmem>>, vector<1x32xf32>
    %25 = vector.broadcast %24 : vector<1x32xf32> to vector<8x32xf32>
    %26 = arith.addf %23, %25 : vector<8x32xf32>
    %cst_27 = arith.constant 0.353553385 : f32
    %27 = vector.broadcast %cst_27 : f32 to vector<8x32xf32>
    %28 = arith.mulf %10, %27 : vector<8x32xf32>
    %29 = arith.truncf %28 : vector<8x32xf32> to vector<8x32xbf16>
    %30 = vector.shape_cast %29 : vector<8x32xbf16> to vector<1x8x32xbf16>
    %31 = arith.truncf %15 : vector<8x32xf32> to vector<8x32xbf16>
    %32 = vector.shape_cast %31 : vector<8x32xbf16> to vector<1x8x32xbf16>
    %33 = arith.truncf %20 : vector<8x32xf32> to vector<8x32xbf16>
    %34 = vector.shape_cast %33 : vector<8x32xbf16> to vector<1x8x32xbf16>
    %35 = vector.shape_cast %26 : vector<8x32xf32> to vector<1x8x32xf32>
    %c0_28 = arith.constant 0 : index
    %c0_29 = arith.constant 0 : index
    %c0_30 = arith.constant 0 : index
    %36 = vector.load %arg4[%c0_28, %c0_29, %c0_30] : memref<1x8x8xi8, #tpu.memory_space<vmem>>, vector<1x8x8xi8>
    %37 = arith.extsi %36 : vector<1x8x8xi8> to vector<1x8x8xi32>
    %c0_i32 = arith.constant 0 : i32
    %38 = vector.broadcast %c0_i32 : i32 to vector<1x8x8xi32>
    %39 = arith.cmpi eq, %37, %38 : vector<1x8x8xi32>
    %cst_31 = arith.constant -1.000000e+30 : f32
    %cst_32 = arith.constant 0.000000e+00 : f32
    %40 = vector.broadcast %cst_31 : f32 to vector<1x8x8xf32>
    %41 = vector.broadcast %cst_32 : f32 to vector<1x8x8xf32>
    %42 = arith.select %39, %40, %41 : vector<1x8x8xi1>, vector<1x8x8xf32>
    %43 = vector.extract_strided_slice %30 {offsets = [0, 0, 0], sizes = [1, 8, 8], strides = [1, 1, 1]} : vector<1x8x32xbf16> to vector<1x8x8xbf16>
    %44 = vector.extract_strided_slice %32 {offsets = [0, 0, 0], sizes = [1, 8, 8], strides = [1, 1, 1]} : vector<1x8x32xbf16> to vector<1x8x8xbf16>
    %45 = vector.extract_strided_slice %34 {offsets = [0, 0, 0], sizes = [1, 8, 8], strides = [1, 1, 1]} : vector<1x8x32xbf16> to vector<1x8x8xbf16>
    %46 = vector.extract_strided_slice %35 {offsets = [0, 0, 0], sizes = [1, 8, 8], strides = [1, 1, 1]} : vector<1x8x32xf32> to vector<1x8x8xf32>
    "tpu.trace_start"() <{level = 10 : i32, message = "bqd,bkd->bqk"}> : () -> ()
    %cst_33 = arith.constant dense<0.000000e+00> : vector<1x8x8xf32>
    %47 = tpu.matmul %43, %44, %cst_33 {dimension_numbers = #tpu.dot_dimension_numbers<[2], [2], [1], [1], [0, 0, 0, 1, 1, 1], [0], [0]>} : vector<1x8x8xbf16>, vector<1x8x8xbf16>, vector<1x8x8xf32> -> vector<1x8x8xf32>
    "tpu.trace_stop"() : () -> ()
    %48 = arith.addf %47, %42 : vector<1x8x8xf32>
    %cst_34 = arith.constant dense<0xFF800000> : vector<1x8xf32>
    %49 = vector.multi_reduction <maximumf>, %48, %cst_34 [2] : vector<1x8x8xf32> to vector<1x8xf32>
    %50 = vector.shape_cast %49 : vector<1x8xf32> to vector<1x8x1xf32>
    %51 = vector.broadcast %50 : vector<1x8x1xf32> to vector<1x8x8xf32>
    %52 = arith.subf %48, %51 : vector<1x8x8xf32>
    %53 = math.exp %52 : vector<1x8x8xf32>
    %cst_35 = arith.constant dense<0.000000e+00> : vector<1x8xf32>
    %54 = vector.multi_reduction <add>, %53, %cst_35 [2] : vector<1x8x8xf32> to vector<1x8xf32>
    %55 = vector.shape_cast %54 : vector<1x8xf32> to vector<1x8x1xf32>
    %56 = tpu.reciprocal %55 {approx = true} : vector<1x8x1xf32> -> vector<1x8x1xf32>
    %57 = vector.broadcast %56 : vector<1x8x1xf32> to vector<1x8x8xf32>
    %58 = arith.mulf %53, %57 : vector<1x8x8xf32>
    %59 = arith.truncf %58 : vector<1x8x8xf32> to vector<1x8x8xbf16>
    "tpu.trace_start"() <{level = 10 : i32, message = "bqk,bkd->bqd"}> : () -> ()
    %cst_36 = arith.constant dense<0.000000e+00> : vector<1x8x8xf32>
    %60 = tpu.matmul %59, %45, %cst_36 {dimension_numbers = #tpu.dot_dimension_numbers<[2], [1], [1], [2], [0, 0, 0, 1, 1, 2], [0], [0]>} : vector<1x8x8xbf16>, vector<1x8x8xbf16>, vector<1x8x8xf32> -> vector<1x8x8xf32>
    "tpu.trace_stop"() : () -> ()
    %61 = arith.mulf %60, %46 : vector<1x8x8xf32>
    %62 = arith.truncf %61 : vector<1x8x8xf32> to vector<1x8x8xbf16>
    %63 = vector.extract_strided_slice %30 {offsets = [0, 0, 8], sizes = [1, 8, 8], strides = [1, 1, 1]} : vector<1x8x32xbf16> to vector<1x8x8xbf16>
    %64 = vector.extract_strided_slice %32 {offsets = [0, 0, 8], sizes = [1, 8, 8], strides = [1, 1, 1]} : vector<1x8x32xbf16> to vector<1x8x8xbf16>
    %65 = vector.extract_strided_slice %34 {offsets = [0, 0, 8], sizes = [1, 8, 8], strides = [1, 1, 1]} : vector<1x8x32xbf16> to vector<1x8x8xbf16>
    %66 = vector.extract_strided_slice %35 {offsets = [0, 0, 8], sizes = [1, 8, 8], strides = [1, 1, 1]} : vector<1x8x32xf32> to vector<1x8x8xf32>
    "tpu.trace_start"() <{level = 10 : i32, message = "bqd,bkd->bqk"}> : () -> ()
    %cst_37 = arith.constant dense<0.000000e+00> : vector<1x8x8xf32>
    %67 = tpu.matmul %63, %64, %cst_37 {dimension_numbers = #tpu.dot_dimension_numbers<[2], [2], [1], [1], [0, 0, 0, 1, 1, 1], [0], [0]>} : vector<1x8x8xbf16>, vector<1x8x8xbf16>, vector<1x8x8xf32> -> vector<1x8x8xf32>
    "tpu.trace_stop"() : () -> ()
    %68 = arith.addf %67, %42 : vector<1x8x8xf32>
    %cst_38 = arith.constant dense<0xFF800000> : vector<1x8xf32>
    %69 = vector.multi_reduction <maximumf>, %68, %cst_38 [2] : vector<1x8x8xf32> to vector<1x8xf32>
    %70 = vector.shape_cast %69 : vector<1x8xf32> to vector<1x8x1xf32>
    %71 = vector.broadcast %70 : vector<1x8x1xf32> to vector<1x8x8xf32>
    %72 = arith.subf %68, %71 : vector<1x8x8xf32>
    %73 = math.exp %72 : vector<1x8x8xf32>
    %cst_39 = arith.constant dense<0.000000e+00> : vector<1x8xf32>
    %74 = vector.multi_reduction <add>, %73, %cst_39 [2] : vector<1x8x8xf32> to vector<1x8xf32>
    %75 = vector.shape_cast %74 : vector<1x8xf32> to vector<1x8x1xf32>
    %76 = tpu.reciprocal %75 {approx = true} : vector<1x8x1xf32> -> vector<1x8x1xf32>
    %77 = vector.broadcast %76 : vector<1x8x1xf32> to vector<1x8x8xf32>
    %78 = arith.mulf %73, %77 : vector<1x8x8xf32>
    %79 = arith.truncf %78 : vector<1x8x8xf32> to vector<1x8x8xbf16>
    "tpu.trace_start"() <{level = 10 : i32, message = "bqk,bkd->bqd"}> : () -> ()
    %cst_40 = arith.constant dense<0.000000e+00> : vector<1x8x8xf32>
    %80 = tpu.matmul %79, %65, %cst_40 {dimension_numbers = #tpu.dot_dimension_numbers<[2], [1], [1], [2], [0, 0, 0, 1, 1, 2], [0], [0]>} : vector<1x8x8xbf16>, vector<1x8x8xbf16>, vector<1x8x8xf32> -> vector<1x8x8xf32>
    "tpu.trace_stop"() : () -> ()
    %81 = arith.mulf %80, %66 : vector<1x8x8xf32>
    %82 = arith.truncf %81 : vector<1x8x8xf32> to vector<1x8x8xbf16>
    %83 = vector.extract_strided_slice %30 {offsets = [0, 0, 16], sizes = [1, 8, 8], strides = [1, 1, 1]} : vector<1x8x32xbf16> to vector<1x8x8xbf16>
    %84 = vector.extract_strided_slice %32 {offsets = [0, 0, 16], sizes = [1, 8, 8], strides = [1, 1, 1]} : vector<1x8x32xbf16> to vector<1x8x8xbf16>
    %85 = vector.extract_strided_slice %34 {offsets = [0, 0, 16], sizes = [1, 8, 8], strides = [1, 1, 1]} : vector<1x8x32xbf16> to vector<1x8x8xbf16>
    %86 = vector.extract_strided_slice %35 {offsets = [0, 0, 16], sizes = [1, 8, 8], strides = [1, 1, 1]} : vector<1x8x32xf32> to vector<1x8x8xf32>
    "tpu.trace_start"() <{level = 10 : i32, message = "bqd,bkd->bqk"}> : () -> ()
    %cst_41 = arith.constant dense<0.000000e+00> : vector<1x8x8xf32>
    %87 = tpu.matmul %83, %84, %cst_41 {dimension_numbers = #tpu.dot_dimension_numbers<[2], [2], [1], [1], [0, 0, 0, 1, 1, 1], [0], [0]>} : vector<1x8x8xbf16>, vector<1x8x8xbf16>, vector<1x8x8xf32> -> vector<1x8x8xf32>
    "tpu.trace_stop"() : () -> ()
    %88 = arith.addf %87, %42 : vector<1x8x8xf32>
    %cst_42 = arith.constant dense<0xFF800000> : vector<1x8xf32>
    %89 = vector.multi_reduction <maximumf>, %88, %cst_42 [2] : vector<1x8x8xf32> to vector<1x8xf32>
    %90 = vector.shape_cast %89 : vector<1x8xf32> to vector<1x8x1xf32>
    %91 = vector.broadcast %90 : vector<1x8x1xf32> to vector<1x8x8xf32>
    %92 = arith.subf %88, %91 : vector<1x8x8xf32>
    %93 = math.exp %92 : vector<1x8x8xf32>
    %cst_43 = arith.constant dense<0.000000e+00> : vector<1x8xf32>
    %94 = vector.multi_reduction <add>, %93, %cst_43 [2] : vector<1x8x8xf32> to vector<1x8xf32>
    %95 = vector.shape_cast %94 : vector<1x8xf32> to vector<1x8x1xf32>
    %96 = tpu.reciprocal %95 {approx = true} : vector<1x8x1xf32> -> vector<1x8x1xf32>
    %97 = vector.broadcast %96 : vector<1x8x1xf32> to vector<1x8x8xf32>
    %98 = arith.mulf %93, %97 : vector<1x8x8xf32>
    %99 = arith.truncf %98 : vector<1x8x8xf32> to vector<1x8x8xbf16>
    "tpu.trace_start"() <{level = 10 : i32, message = "bqk,bkd->bqd"}> : () -> ()
    %cst_44 = arith.constant dense<0.000000e+00> : vector<1x8x8xf32>
    %100 = tpu.matmul %99, %85, %cst_44 {dimension_numbers = #tpu.dot_dimension_numbers<[2], [1], [1], [2], [0, 0, 0, 1, 1, 2], [0], [0]>} : vector<1x8x8xbf16>, vector<1x8x8xbf16>, vector<1x8x8xf32> -> vector<1x8x8xf32>
    "tpu.trace_stop"() : () -> ()
    %101 = arith.mulf %100, %86 : vector<1x8x8xf32>
    %102 = arith.truncf %101 : vector<1x8x8xf32> to vector<1x8x8xbf16>
    %103 = vector.extract_strided_slice %30 {offsets = [0, 0, 24], sizes = [1, 8, 8], strides = [1, 1, 1]} : vector<1x8x32xbf16> to vector<1x8x8xbf16>
    %104 = vector.extract_strided_slice %32 {offsets = [0, 0, 24], sizes = [1, 8, 8], strides = [1, 1, 1]} : vector<1x8x32xbf16> to vector<1x8x8xbf16>
    %105 = vector.extract_strided_slice %34 {offsets = [0, 0, 24], sizes = [1, 8, 8], strides = [1, 1, 1]} : vector<1x8x32xbf16> to vector<1x8x8xbf16>
    %106 = vector.extract_strided_slice %35 {offsets = [0, 0, 24], sizes = [1, 8, 8], strides = [1, 1, 1]} : vector<1x8x32xf32> to vector<1x8x8xf32>
    "tpu.trace_start"() <{level = 10 : i32, message = "bqd,bkd->bqk"}> : () -> ()
    %cst_45 = arith.constant dense<0.000000e+00> : vector<1x8x8xf32>
    %107 = tpu.matmul %103, %104, %cst_45 {dimension_numbers = #tpu.dot_dimension_numbers<[2], [2], [1], [1], [0, 0, 0, 1, 1, 1], [0], [0]>} : vector<1x8x8xbf16>, vector<1x8x8xbf16>, vector<1x8x8xf32> -> vector<1x8x8xf32>
    "tpu.trace_stop"() : () -> ()
    %108 = arith.addf %107, %42 : vector<1x8x8xf32>
    %cst_46 = arith.constant dense<0xFF800000> : vector<1x8xf32>
    %109 = vector.multi_reduction <maximumf>, %108, %cst_46 [2] : vector<1x8x8xf32> to vector<1x8xf32>
    %110 = vector.shape_cast %109 : vector<1x8xf32> to vector<1x8x1xf32>
    %111 = vector.broadcast %110 : vector<1x8x1xf32> to vector<1x8x8xf32>
    %112 = arith.subf %108, %111 : vector<1x8x8xf32>
    %113 = math.exp %112 : vector<1x8x8xf32>
    %cst_47 = arith.constant dense<0.000000e+00> : vector<1x8xf32>
    %114 = vector.multi_reduction <add>, %113, %cst_47 [2] : vector<1x8x8xf32> to vector<1x8xf32>
    %115 = vector.shape_cast %114 : vector<1x8xf32> to vector<1x8x1xf32>
    %116 = tpu.reciprocal %115 {approx = true} : vector<1x8x1xf32> -> vector<1x8x1xf32>
    %117 = vector.broadcast %116 : vector<1x8x1xf32> to vector<1x8x8xf32>
    %118 = arith.mulf %113, %117 : vector<1x8x8xf32>
    %119 = arith.truncf %118 : vector<1x8x8xf32> to vector<1x8x8xbf16>
    "tpu.trace_start"() <{level = 10 : i32, message = "bqk,bkd->bqd"}> : () -> ()
    %cst_48 = arith.constant dense<0.000000e+00> : vector<1x8x8xf32>
    %120 = tpu.matmul %119, %105, %cst_48 {dimension_numbers = #tpu.dot_dimension_numbers<[2], [1], [1], [2], [0, 0, 0, 1, 1, 2], [0], [0]>} : vector<1x8x8xbf16>, vector<1x8x8xbf16>, vector<1x8x8xf32> -> vector<1x8x8xf32>
    "tpu.trace_stop"() : () -> ()
    %121 = arith.mulf %120, %106 : vector<1x8x8xf32>
    %122 = arith.truncf %121 : vector<1x8x8xf32> to vector<1x8x8xbf16>
    %123 = tpu.concatenate %62, %82, %102, %122 in 2 : vector<1x8x8xbf16>, vector<1x8x8xbf16>, vector<1x8x8xbf16>, vector<1x8x8xbf16> -> vector<1x8x32xbf16>
    %124 = vector.shape_cast %123 : vector<1x8x32xbf16> to vector<8x32xbf16>
    %c0_49 = arith.constant 0 : index
    %c0_50 = arith.constant 0 : index
    %125 = vector.load %arg16[%c0_49, %c0_50] : memref<8x32xbf16, #tpu.memory_space<vmem>>, vector<8x32xbf16>
    tpu.vector_store %arg16[%c0_49, %c0_50], %124 {strides = array<i32>} : memref<8x32xbf16, #tpu.memory_space<vmem>>, vector<8x32xbf16>,
    %c0_51 = arith.constant 0 : index
    %c0_52 = arith.constant 0 : index
    %126 = vector.load %arg16[%c0_51, %c0_52] : memref<8x32xbf16, #tpu.memory_space<vmem>>, vector<8x32xbf16>
    %c0_53 = arith.constant 0 : index
    %c0_54 = arith.constant 0 : index
    %127 = vector.load %arg13[%c0_53, %c0_54] : memref<32x32xbf16, #tpu.memory_space<vmem>>, vector<32x32xbf16>
    %cst_55 = arith.constant dense<0.000000e+00> : vector<8x32xf32>
    %128 = tpu.matmul %126, %127, %cst_55 {dimension_numbers = #tpu.dot_dimension_numbers<[1], [0], [0], [1], [0, 0, 1, 1], [], []>} : vector<8x32xbf16>, vector<32x32xbf16>, vector<8x32xf32> -> vector<8x32xf32>
    %c0_56 = arith.constant 0 : index
    %c0_57 = arith.constant 0 : index
    %129 = vector.load %arg14[%c0_56, %c0_57] : memref<1x32xf32, #tpu.memory_space<vmem>>, vector<1x32xf32>
    %130 = vector.broadcast %129 : vector<1x32xf32> to vector<8x32xf32>
    %131 = arith.addf %128, %130 : vector<8x32xf32>
    %132 = vector.shape_cast %131 : vector<8x32xf32> to vector<1x8x32xf32>
    %c0_58 = arith.constant 0 : index
    %c0_59 = arith.constant 0 : index
    %c0_60 = arith.constant 0 : index
    %133 = vector.load %arg15[%c0_58, %c0_59, %c0_60] : memref<1x8x32xf32, #tpu.memory_space<vmem>>, vector<1x8x32xf32>
    tpu.vector_store %arg15[%c0_58, %c0_59, %c0_60], %132 {strides = array<i32>} : memref<1x8x32xf32, #tpu.memory_space<vmem>>, vector<1x8x32xf32>,
    return
  }
  func.func @transform_0(%arg0: i32) -> (i32, i32, i32) {
    %c0_i32 = arith.constant 0 : i32
    %c0_i32_0 = arith.constant 0 : i32
    %c0_i32_1 = arith.constant 0 : i32
    return %arg0, %c0_i32, %c0_i32_0 : i32, i32, i32
  }
  func.func @transform_1(%arg0: i32) -> (i32, i32, i32) {
    %c0_i32 = arith.constant 0 : i32
    %c0_i32_0 = arith.constant 0 : i32
    %c0_i32_1 = arith.constant 0 : i32
    return %arg0, %c0_i32, %c0_i32_0 : i32, i32, i32
  }
  func.func @transform_2(%arg0: i32) -> (i32, i32, i32) {
    %c0_i32 = arith.constant 0 : i32
    %c0_i32_0 = arith.constant 0 : i32
    %c0_i32_1 = arith.constant 0 : i32
    return %arg0, %c0_i32, %c0_i32_0 : i32, i32, i32
  }
  func.func @transform_3(%arg0: i32) -> (i32, i32, i32) {
    %c0_i32 = arith.constant 0 : i32
    %c0_i32_0 = arith.constant 0 : i32
    %c0_i32_1 = arith.constant 0 : i32
    return %arg0, %c0_i32, %c0_i32_0 : i32, i32, i32
  }
  func.func @transform_4(%arg0: i32) -> (i32, i32) {
    %c0_i32 = arith.constant 0 : i32
    %c0_i32_0 = arith.constant 0 : i32
    %c0_i32_1 = arith.constant 0 : i32
    return %c0_i32, %c0_i32_0 : i32, i32
  }
  func.func @transform_5(%arg0: i32) -> (i32, i32) {
    %c0_i32 = arith.constant 0 : i32
    %c0_i32_0 = arith.constant 0 : i32
    %c0_i32_1 = arith.constant 0 : i32
    return %c0_i32, %c0_i32_0 : i32, i32
  }
  func.func @transform_6(%arg0: i32) -> (i32, i32) {
    %c0_i32 = arith.constant 0 : i32
    %c0_i32_0 = arith.constant 0 : i32
    %c0_i32_1 = arith.constant 0 : i32
    return %c0_i32, %c0_i32_0 : i32, i32
  }
  func.func @transform_7(%arg0: i32) -> (i32, i32) {
    %c0_i32 = arith.constant 0 : i32
    %c0_i32_0 = arith.constant 0 : i32
    %c0_i32_1 = arith.constant 0 : i32
    return %c0_i32, %c0_i32_0 : i32, i32
  }
  func.func @transform_8(%arg0: i32) -> (i32, i32) {
    %c0_i32 = arith.constant 0 : i32
    %c0_i32_0 = arith.constant 0 : i32
    %c0_i32_1 = arith.constant 0 : i32
    return %c0_i32, %c0_i32_0 : i32, i32
  }
  func.func @transform_9(%arg0: i32) -> (i32, i32) {
    %c0_i32 = arith.constant 0 : i32
    %c0_i32_0 = arith.constant 0 : i32
    %c0_i32_1 = arith.constant 0 : i32
    return %c0_i32, %c0_i32_0 : i32, i32
  }
  func.func @transform_10(%arg0: i32) -> (i32, i32) {
    %c0_i32 = arith.constant 0 : i32
    %c0_i32_0 = arith.constant 0 : i32
    %c0_i32_1 = arith.constant 0 : i32
    return %c0_i32, %c0_i32_0 : i32, i32
  }
  func.func @transform_11(%arg0: i32) -> (i32, i32) {
    %c0_i32 = arith.constant 0 : i32
    %c0_i32_0 = arith.constant 0 : i32
    %c0_i32_1 = arith.constant 0 : i32
    return %c0_i32, %c0_i32_0 : i32, i32
  }
  func.func @transform_12(%arg0: i32) -> (i32, i32) {
    %c0_i32 = arith.constant 0 : i32
    %c0_i32_0 = arith.constant 0 : i32
    %c0_i32_1 = arith.constant 0 : i32
    return %c0_i32, %c0_i32_0 : i32, i32
  }
  func.func @transform_13(%arg0: i32) -> (i32, i32) {
    %c0_i32 = arith.constant 0 : i32
    %c0_i32_0 = arith.constant 0 : i32
    %c0_i32_1 = arith.constant 0 : i32
    return %c0_i32, %c0_i32_0 : i32, i32
  }
  func.func @transform_14(%arg0: i32) -> (i32, i32, i32) {
    %c0_i32 = arith.constant 0 : i32
    %c0_i32_0 = arith.constant 0 : i32
    %c0_i32_1 = arith.constant 0 : i32
    return %arg0, %c0_i32, %c0_i32_0 : i32, i32, i32
  }
}

</mosaic_0001>

<bundles_post_ra>
// kernel: tpu_custom_call.1
= control target key start
LH: loop header
LB: loop body
LE: loop exit
PB: predicated region body
PF: predicated region fallthrough
CT: control target
= control target key end

     0   :  { %s2373_s0 = inlined_call_operand.hbm [shape: bf16[2,8,32], index: 0, kind: input, shape index: {}]   ;;  %s2374_s1 = inlined_call_operand.hbm [shape: bf16[2,8,32], index: 1, kind: input, shape index: {}]   ;;  %s2375_s2 = inlined_call_operand.hbm [shape: bf16[2,8,32], index: 2, kind: input, shape index: {}]   ;;  %s2376_s3 = inlined_call_operand.hbm [shape: s8[2,8,8], index: 3, kind: input, shape index: {}]   ;;  %s2377_s4 = inlined_call_operand.hbm [shape: bf16[32,32], index: 4, kind: input, shape index: {}]   ;;  %s2378_s5 = inlined_call_operand.vmem [shape: f32[1,32], index: 5, kind: input, shape index: {}]   ;;  %s2379_s6 = inlined_call_operand.hbm [shape: bf16[32,32], index: 6, kind: input, shape index: {}]   ;;  %s2380_s7 = inlined_call_operand.vmem [shape: f32[1,32], index: 7, kind: input, shape index: {}]   ;;  %s2381_s8 = inlined_call_operand.hbm [shape: bf16[32,32], index: 8, kind: input, shape index: {}]   ;;  %s2382_s9 = inlined_call_operand.vmem [shape: f32[1,32], index: 9, kind: input, shape index: {}]   ;;  %s2383_s10 = inlined_call_operand.hbm [shape: bf16[32,32], index: 10, kind: input, shape index: {}]   ;;  %s2384_s11 = inlined_call_operand.vmem [shape: f32[1,32], index: 11, kind: input, shape index: {}]   ;;  %s2385_s12 = inlined_call_operand.hbm [shape: bf16[32,32], index: 12, kind: input, shape index: {}]   ;;  %s2386_s13 = inlined_call_operand.vmem [shape: f32[1,32], index: 13, kind: input, shape index: {}]   ;;  %s2387_s14 = inlined_call_operand.hbm [shape: f32[2,8,32], index: 14, kind: output, shape index: {}]  }
   0x1   :  { %2402 = sst [smem:[#allocation32_spill]] %s2374_s1 }
   0x2   :  { %2403 = sst [smem:[#allocation33_spill]] %s2377_s4 }
   0x3   :  { %2404 = sst [smem:[#allocation34_spill]] %s2379_s6 }
   0x4   :  { %2405 = sst [smem:[#allocation35_spill]] %s2381_s8 }
   0x5   :  { %2406 = sst [smem:[#allocation36_spill]] %s2383_s10 }
   0x6   :  { %2407 = sst [smem:[#allocation37_spill]] %s2384_s11 }
   0x7   :  { %2408 = sst [smem:[#allocation38_spill]] %s2385_s12 }
   0x8   :  { %2409 = sst [smem:[#allocation39_spill]] %s2386_s13 }
   0x9   :  { %2410 = sst [smem:[#allocation40_spill]] %s2387_s14 }
   0xa   :  { %19 = vsyncpa [#allocation4], 0 }
   0xb   :  { %21 = vsyncpa [#allocation4 + $0x1], 0 }
   0xc   :  { %22 = vsyncpa [#allocation7], 0 }
   0xd   :  { %24 = vsyncpa [#allocation7 + $0x1], 0 }
   0xe   :  { %25 = vsyncpa [#allocation10], 0 }
   0xf   :  { %27 = vsyncpa [#allocation10 + $0x1], 0 }
  0x10   :  { %28 = vsyncpa [#allocation13], 0 }
  0x11   :  { %29 = vsyncpa [#allocation16], 0 }
  0x12   :  { %30 = vsyncpa [#allocation5], 0 }
  0x13   :  { %32 = vsyncpa [#allocation5 + $0x1], 0  ;;  %s2033_s29 = smov 0   ;;  %s2035_s30 = smov 0  }
  0x14   :  { %s2037_s15 = smov 0   ;;  %s2039_s16 = smov 0  }
  0x15 LB: > { %2411 = sst [smem:[#allocation26_spill]] %s1930_s29  ;;  %s2057_s20 = sadd.s32 4294967295, %s1942_s16   ;;  %s1942_s16 = sphi %s2039_s16, %s2445_s16   ;;  %s1938_s15 = sphi %s2037_s15, %s2447_s15   ;;  %s1934_s30 = sphi %s2035_s30, %s2449_s30   ;;  %s1930_s29 = sphi %s2033_s29, %s2448_s29  }
  0x16   : > { %2412 = sst [smem:[#allocation27_spill]] %s1938_s15  ;;  %p1351_p0 = scmp.ge.s32.totalorder %s1942_s16, 1 }
  0x17   : > { %s2413_s4 = sld [smem:[#allocation33_spill]]  ;;  %p2400_p1 = scmp.eq.s32.totalorder %s2057_s20, 0 }
  0x18   : > { %p383_p2 = scmp.lt.s32.totalorder %s1942_s16, 3  ;;  %s1944_s22 = smov [#allocation11]  }
  0x19   : > { %s396_s23 = sshll.u32 %s1944_s22, 4  ;;  %s2415_s6 = sld [smem:[#allocation34_spill]]  ;;  %s397_s23 = int_to_ptr.vmem [resolvable:$true] %s396_s23 }
  0x1a   : > { %p2062_p3 = pnand %p1351_p0, %p383_p2  ;;  %s2417_s10 = sld [smem:[#allocation36_spill]] }
  0x1b   : > { %s1945_s22 = smov [#allocation12]   ;;  %s2388_s25 = smov 64  }
  0x1c   : > { %p1474_p4 = pneg %p2062_p3  ;;  %s413_s24 = sshll.u32 %s1945_s22, 4  ;;  %s414_s24 = int_to_ptr.vmem [resolvable:$true] %s413_s24 }
  0x1d   : > { %s394_s19 = sshll.u32 %s2413_s4, 4  ;;  %s2390_s4 = smov 4   ;;  %s395_s19 = int_to_ptr.hbm [resolvable:$true] %s394_s19 }
  0x1e   : > { %p2074_p6 = pnand %p1474_p4, %p2400_p1  ;;  %s1948_s28 = smov [#allocation15]  }
  0x1f   : > { %s411_s26 = sshll.u32 %s2415_s6, 4  ;;  %s447_s17 = sshll.u32 %s1948_s28, 4  ;;  %s412_s26 = int_to_ptr.hbm [resolvable:$true] %s411_s26  ;;  %s448_s17 = int_to_ptr.vmem [resolvable:$true] %s447_s17 }
  0x20   : > { %s445_s18 = sshll.u32 %s2417_s10, 4  ;;  %s45_s22 = sadd.s32 1, %s1938_s15  ;;  %s446_s18 = int_to_ptr.hbm [resolvable:$true] %s445_s18 }
  0x21   : > { %1477 = dma.hbm_to_vmem [thread:$0]  (!%p2074_p6), %s395_s19, 256, %s397_s23, [#allocation10], %s2388_s25, %s2388_s25, %s2390_s4  }
  0x22   : > { %1480 = dma.hbm_to_vmem [thread:$0]  (!%p2074_p6), %s412_s26, 256, %s414_s24, [#allocation13], %s2388_s25, %s2388_s25, %s2390_s4  }
  0x23   : > { %1486 = dma.hbm_to_vmem [thread:$0]  (!%p2074_p6), %s446_s18, 256, %s448_s17, [#allocation16], %s2388_s25, %s2388_s25, %s2390_s4  }
  0x24   : > { %s1350_s19 = sadd.s32 4294967294, %s1942_s16   ;;  %s2098_s23 = sadd.s32 1, %s1942_s16  }
  0x25   : > { %2418 = sst [smem:[#allocation28_spill]] %s2098_s23  ;;  %s42_s6 = ssub.s32 %s1942_s16, %s2098_s23 }
  0x26   : > { %p52_p7 = scmp.ne.s32.totalorder %s1938_s15, %s1934_s30  ;;  %p43_p8 = scmp.eq.s32.totalorder %s42_s6, 0 }
  0x27   : > { %p53_p9 = scmp.eq.s32.totalorder %s1942_s16, 0  ;;  %p58_p10 = scmp.ne.s32.totalorder %s1934_s30, %s1930_s29 }
  0x28   : > { %p370_p11 = scmp.eq.s32.totalorder %s2057_s20, 1  ;;  %p376_p2 = scmp.eq.s32.totalorder %s1350_s19, 1 }
  0x29   : > { %s2110_s26 = scalar_select %p43_p8, %s1938_s15, %s45_s22  }
  0x2a   : > { %p54_p12 = por %p53_p9, %p52_p7  ;;  %p2114_p13 = por %p2400_p1, %p58_p10 }
  0x2b   : > { %2419 = sst [smem:[#allocation29_spill]] %s2110_s26  ;;  %p2118_p0 = por %p370_p11, %p52_p7 }
  0x2c   : > { %p1512_p4 = scmp.lt.s32.totalorder %s1942_s16, 2  ;;  %s2124_s28 = sand.u32 1, %s1938_s15  }
  0x2d   : > { %s2421_s24 = scalar_select %p2118_p0, 1, 0 }
  0x2e   : > { %p2126_p5 = por %p376_p2, %p58_p10  ;;  %s2131_s17 = sshll.u32 %s2124_s28, 2 }
  0x2f   : > { %2422 = sst [smem:[#allocation30_spill]] %s2421_s24  ;;  %s2134_s22 = sshll.u32 %s1942_s16, 2 }
  0x30   : > { %s2423_s6 = scalar_select %p2126_p5, 1, 0 }
  0x31   : > { %p2136_p8 = pnand %p1512_p4, %p54_p12  ;;  %s2401_s19 = sand.u32 1, %s1942_s16  }
  0x32   : > { %2424 = sst [smem:[#allocation31_spill]] %s2423_s6  ;;  %s504_s15 = scalar_lea.vmem [#allocation6], %s2131_s17 }
  0x33   : > { %s2426_s1 = sld [smem:[#allocation32_spill]]  ;;  %s512_s23 = sshll.u32 %s504_s15, 4  ;;  %s513_s23 = int_to_ptr.vmem [resolvable:$true] %s512_s23 }
  0x34   : > { %s2148_s29 = scalar_lea.sflag [#allocation7], %s2401_s19  ;;  %p1680_p9 = pneg %p2136_p8 }
  0x39   : > { %s508_s26 = scalar_lea.hbm %s2426_s1, %s2134_s22  ;;  %s1683_s15 = scalar_lea.hbm %s2426_s1, 8 }
  0x3a   : > { %s510_s6 = sshll.u32 %s508_s26, 4  ;;  %s511_s6 = int_to_ptr.hbm [resolvable:$true] %s510_s6 }
  0x3b   : > { %s1676_s13 = sshra.s32 %s511_s6, 4  ;;  %s1677_s13 = int_to_ptr.hbm [resolvable:$true] %s1676_s13 }
  0x3c   : > { %s1678_s24 = scalar_lea.hbm %s1677_s13, 4  ;;  %p1684_p12 = scmp.lt.s32.totalorder %s1677_s13, %s2426_s1 }
  0x3d   : > { %p1679_p7 = scmp.ne.s32.totalorder %s1677_s13, %s1678_s24  ;;  %p1685_p2 = scmp.lt.s32.totalorder %s1683_s15, %s1678_s24 }
  0x3f   : > { %p1681_p10 = pnand %p1680_p9, %p1679_p7  ;;  %p1686_p4 = por %p1685_p2, %p1684_p12 }
  0x41   : > { %p1682_p11 = pneg %p1681_p10 }
  0x43   : > { %p1687_p1 = pnand %p1686_p4, %p1682_p11 }
  0x45   : > { %1690 = shalt.err (!%p1687_p1)
}
  0x46   : > { %1496 = dma.hbm_to_vmem [thread:$0]  (!%p2136_p8), %s511_s6, 64, %s513_s23, %s2148_s29  }
  0x47   : > { %s2427_s8 = sld [smem:[#allocation35_spill]]  ;;  %s1949_s10 = smov [#allocation14]  }
  0x48   : > { %s430_s13 = sshll.u32 %s1949_s10, 4  ;;  %s2428_s12 = sld [smem:[#allocation38_spill]]  ;;  %s431_s13 = int_to_ptr.vmem [resolvable:$true] %s430_s13 }
  0x49   : > { %s2429_s26 = smov 4   ;;  %s2430_s1 = smov 64  }
  0x4a   : > { %s1950_s23 = smov [#allocation17]   ;;  %s489_s10 = scalar_lea.hbm %s2373_s0, %s2134_s22 }
  0x4b   : > { %s464_s6 = sshll.u32 %s1950_s23, 4  ;;  %s485_s14 = scalar_lea.vmem [#allocation3], %s2131_s17  ;;  %s465_s6 = int_to_ptr.vmem [resolvable:$true] %s464_s6 }
  0x4c   : > { %s493_s24 = sshll.u32 %s485_s14, 4  ;;  %s494_s24 = int_to_ptr.vmem [resolvable:$true] %s493_s24 }
  0x4d   : > { %s428_s4 = sshll.u32 %s2427_s8, 4  ;;  %s491_s8 = sshll.u32 %s489_s10, 4  ;;  %s429_s4 = int_to_ptr.hbm [resolvable:$true] %s428_s4  ;;  %s492_s8 = int_to_ptr.hbm [resolvable:$true] %s491_s8 }
  0x4e   : > { %s462_s15 = sshll.u32 %s2428_s12, 4  ;;  %s463_s15 = int_to_ptr.hbm [resolvable:$true] %s462_s15 }
  0x4f   : > { %1483 = dma.hbm_to_vmem [thread:$0]  (!%p2074_p6), %s429_s4, 256, %s431_s13, [#allocation13], %s2430_s1, %s2430_s1, %s2429_s26  }
  0x50   : > { %1489 = dma.hbm_to_vmem [thread:$0]  (!%p2074_p6), %s463_s15, 256, %s465_s6, [#allocation16], %s2430_s1, %s2430_s1, %s2429_s26  }
  0x51   : > { %s482_s4 = scalar_lea.sflag [#allocation4], %s2124_s28  ;;  %s1766_s13 = sshra.s32 %s492_s8, 4  ;;  %s1767_s13 = int_to_ptr.hbm [resolvable:$true] %s1766_s13 }
  0x52   : > { %s1768_s12 = scalar_lea.hbm %s1767_s13, 4  ;;  %s1773_s15 = scalar_lea.hbm %s2373_s0, 8 }
  0x53   : > { %p1769_p1 = scmp.ne.s32.totalorder %s1767_s13, %s1768_s12  ;;  %p1774_p6 = scmp.lt.s32.totalorder %s1767_s13, %s2373_s0 }
  0x54   : > { %p1775_p11 = scmp.lt.s32.totalorder %s1773_s15, %s1768_s12 }
  0x55   : > { %p1771_p7 = pnand %p1769_p1, %p1680_p9 }
  0x56   : > { %p1776_p12 = por %p1775_p11, %p1774_p6 }
  0x57   : > { %p1772_p10 = pneg %p1771_p7 }
  0x59   : > { %p1777_p2 = pnand %p1776_p12, %p1772_p10 }
  0x5b   : > { %1780 = shalt.err (!%p1777_p2)
}
  0x5c   : > { %1493 = dma.hbm_to_vmem [thread:$0]  (!%p2136_p8), %s492_s8, 64, %s494_s24, %s482_s4  }
  0x5d   : > { %s527_s19 = scalar_lea.hbm %s2375_s2, %s2134_s22  ;;  %s523_s10 = scalar_lea.vmem [#allocation8], %s2131_s17 }
  0x5e   : > { %s531_s14 = sshll.u32 %s523_s10, 4  ;;  %s529_s27 = sshll.u32 %s527_s19, 4  ;;  %s532_s14 = int_to_ptr.vmem [resolvable:$true] %s531_s14  ;;  %s530_s27 = int_to_ptr.hbm [resolvable:$true] %s529_s27 }
  0x5f   : > { %s1364_s12 = sshll.u32 %s2124_s28, 1  ;;  %s1796_s13 = sshra.s32 %s530_s27, 4  ;;  %s1797_s13 = int_to_ptr.hbm [resolvable:$true] %s1796_s13 }
  0x60   : > { %s1798_s1 = scalar_lea.hbm %s1797_s13, 4  ;;  %s1803_s24 = scalar_lea.hbm %s2375_s2, 8 }
  0x61   : > { %p1799_p4 = scmp.ne.s32.totalorder %s1797_s13, %s1798_s1  ;;  %p1804_p10 = scmp.lt.s32.totalorder %s1797_s13, %s2375_s2 }
  0x62   : > { %p1805_p6 = scmp.lt.s32.totalorder %s1803_s24, %s1798_s1 }
  0x63   : > { %p1801_p1 = pnand %p1799_p4, %p1680_p9 }
  0x64   : > { %p1806_p11 = por %p1805_p6, %p1804_p10 }
  0x65   : > { %p1802_p7 = pneg %p1801_p1 }
  0x67   : > { %p1807_p12 = pnand %p1806_p11, %p1802_p7 }
  0x69   : > { %1810 = shalt.err (!%p1807_p12)
}
  0x6a   : > { %1499 = dma.hbm_to_vmem [thread:$0]  (!%p2136_p8), %s530_s27, 64, %s532_s14, %s2148_s29  }
  0x6b   : > { %s1365_s28 = sshll.u32 %s1942_s16, 1  ;;  %s542_s6 = scalar_lea.vmem [#allocation9], %s1364_s12 }
  0x6c   : > { %s546_s23 = scalar_lea.hbm %s2376_s3, %s1365_s28  ;;  %s550_s11 = sshll.u32 %s542_s6, 4  ;;  %s551_s11 = int_to_ptr.vmem [resolvable:$true] %s550_s11 }
  0x6d   : > { %s548_s19 = sshll.u32 %s546_s23, 4  ;;  %s2431_s10 = sand.u32 1, %s1942_s16   ;;  %s549_s19 = int_to_ptr.hbm [resolvable:$true] %s548_s19 }
  0x6e   : > { %s539_s13 = scalar_lea.sflag [#allocation10], %s2431_s10  ;;  %s1826_s1 = sshra.s32 %s549_s19, 4  ;;  %s1827_s1 = int_to_ptr.hbm [resolvable:$true] %s1826_s1 }
  0x6f   : > { %s1828_s15 = scalar_lea.hbm %s1827_s1, 2  ;;  %s1833_s27 = scalar_lea.hbm %s2376_s3, 4 }
  0x70   : > { %p1829_p2 = scmp.ne.s32.totalorder %s1827_s1, %s1828_s15  ;;  %p1834_p7 = scmp.lt.s32.totalorder %s1827_s1, %s2376_s3 }
  0x71   : > { %p1835_p10 = scmp.lt.s32.totalorder %s1833_s27, %s1828_s15 }
  0x72   : > { %p1831_p4 = pnand %p1829_p2, %p1680_p9 }
  0x73   : > { %p1836_p6 = por %p1835_p10, %p1834_p7 }
  0x74   : > { %p1832_p1 = pneg %p1831_p4 }
  0x76   : > { %p1837_p11 = pnand %p1836_p6, %p1832_p1 }
  0x78   : > { %1840 = shalt.err (!%p1837_p11)
}
  0x79   : > { %1502 = dma.hbm_to_vmem [thread:$0]  (!%p2136_p8), %s549_s19, 32, %s551_s11, %s539_s13  }
  0x7a   : > { %559 = sbr.rel (%p2062_p3) target bundleno = 1233 (0x4d1), region = 76  ;;  %s2235_s24 = sand.u32 (!%p2062_p3), 1, %s1934_s30  }
  0x7b   : > { %s2238_s4 = sshll.u32 (!%p2062_p3), %s2235_s24, 2  ;;  %s562_s22 = scalar_lea.sflag (!%p2062_p3), [#allocation4], %s2235_s24 }
  0x7c   : > { %s565_s28 = scalar_lea.vmem (!%p2062_p3), [#allocation3], %s2238_s4 }
  0x7f   : > { %1901 = dma.done.wait (%p2114_p13), %s562_s22, 64  }
  0x80   : > { %1903 = vsyncadd (%p2114_p13), %s562_s22, 4294967232  ;;  %s571_s21 = sand.u32 1, %s2057_s20   ;;  %s575_s17 = scalar_lea.vmem [#allocation6], %s2238_s4 }
  0x81   : > { %s572_s25 = scalar_lea.sflag [#allocation7], %s571_s21 }
  0x82   : > { %1905 = dma.done.wait (%p2114_p13), %s572_s25, 128  }
  0x83   : > { %1907 = vsyncadd (%p2114_p13), %s572_s25, 4294967168  ;;  %s1370_s26 = sshll.u32 %s2235_s24, 1  ;;  %s585_s23 = scalar_lea.vmem [#allocation8], %s2238_s4 }
  0x84   : > { %s592_s6 = scalar_lea.sflag [#allocation10], %s571_s21  ;;  %s2254_s11 = scalar_lea.vmem [#allocation9], %s1370_s26 }
  0x85   : > { %1909 = dma.done.wait (%p2114_p13), %s592_s6, 32  }
  0x86   : > { %1911 = vsyncadd (%p2114_p13), %s592_s6, 4294967264  ;;  %p2432_p3 = scmp.eq.s32.totalorder %s2057_s20, 0 }
  0x88   : > { %1913 = dma.done.wait (%p2432_p3), [#allocation10], 256   ;;  %p2433_p8 = pmov %p2432_p3 }
  0x89   : > { %p2434_p9 = pmov %p2432_p3 }
  0x8a   : > { %1915 = vsyncadd (%p2433_p8), [#allocation10], 4294967040 }
  0x8b   : > { %1917 = dma.done.wait (%p2434_p9), [#allocation13], 512   ;;  %p2435_p12 = pmov %p2432_p3 }
  0x8c   : > { %p2436_p2 = pmov %p2432_p3 }
  0x8d   : > { %1919 = vsyncadd (%p2435_p12), [#allocation13], 4294966784 }
  0x8e   : > { %1921 = dma.done.wait (%p2436_p2), [#allocation16], 512   ;;  %p2437_p4 = pmov %p2436_p2 }
  0x8f   : > { %v1435_v0 = vld [vmem:[#allocation11 + $0x8] sm:$0xff]  ;;  %v1437_v1 = vld [vmem:[#allocation12 + $0x8] sm:$0xff]  ;;  %v1434_v2 = vld [vmem:[#allocation11] sm:$0xff]  ;;  %vm705_vm0 = vcmask 261120   ;;  %vm839_vm1 = vcmask 64512   ;;  %s1951_s1 = smov 112  }
  0x90   : > { %1923 = vsyncadd (%p2437_p4), [#allocation16], 4294966784  ;;  %715 = vmatpush.bf16.msra.mxu0 %v1435_v0  ;;  %751 = vmatpush.bf16.msra.mxu1 %v1437_v1  ;;  %v1436_v3 = vld [vmem:[#allocation12] sm:$0xff]  ;;  %v1441_v4 = vld [vmem:[#allocation15 + $0x8] sm:$0xff]  ;;  %s1952_s15 = smov 104   ;;  %s1953_s29 = smov 120  }
  0x91   : > { %824 = vmatpush.bf16.msra.mxu3 %v1441_v4  ;;  %v682_v5 = vld [vmem:[%s565_s28] sm:$0xf]  ;;  %v683_v6 = vld [vmem:[%s575_s17] sm:$0xf]  ;;  %v1565_v8 = vld [vmem:[%s2378_s5] ss:$0 sm:$0xff] }
  0x92   : > { %v1440_v7 = vld [vmem:[#allocation15] sm:$0xff]  ;;  %v1566_v9 = vld [vmem:[%s2380_s7] ss:$0 sm:$0xff]  ;;  %v1439_v25 = vld [vmem:[#allocation14 + $0x8] sm:$0xff]  ;;  %v1954_v39 = vmov 0.0   ;;  %vm874_vm3 = vcmask 1043456  }
  0x93   : > { %787 = vmatpush.bf16.msra.mxu2 %v1439_v25  ;;  %v1438_v26 = vld [vmem:[#allocation14] sm:$0xff]  ;;  %v684_v27 = vld [vmem:[%s585_s23] sm:$0xf]  ;;  %v835_v35 = vld [vmem:[%s2254_s11] sm:$0x3]  ;;  %s2438_s4 = sld [smem:[#allocation37_spill]] }
  0x94   : > { %716 = vmatpush.bf16.msra.mxu0 %v1434_v2  ;;  %752 = vmatpush.bf16.msra.mxu1 %v1436_v3  ;;  %v836_v36 = vunpack.c.0.s8 %v835_v35  ;;  %v1568_v47 = vld [vmem:[%s2382_s9] ss:$0 sm:$0xff]  ;;  %s1955_s22 = smov 8   ;;  %s1956_s28 = smov 24   ;;  %vm1104_vm4 = vcmask 130048   ;;  %vm1107_vm5 = vcmask 195584  }
  0x95   : > { %825 = vmatpush.bf16.msra.mxu3 %v1440_v7  ;;  %s1957_s21 = smov 16   ;;  %vm1111_vm6 = vcmask 257024   ;;  %s1431_s25 = sshll.u32 %s2057_s20, 3 }
  0x96   : > { %vm837_vm2 = vcmp.eq.s32.totalorder %v836_v36, 0  ;;  %s1376_s17 = sshll.u32 %s2235_s24, 3  ;;  %s2439_s6 = sld [smem:[#allocation40_spill]] }
  0x97   : > { %1385 = vmatmul.msk.bf16.vlgmr.msra.gmra.mxu0 %vm705_vm0, %v682_v5  ;;  %1394 = vmatmul.msk.bf16.vlgmr.msra.gmra.mxu1 %vm705_vm0, %v683_v6  ;;  %v838_v40 = vsel %vm837_vm2, -1e+30, %v1954_v39  ;;  %s2441_s13 = sld [smem:[#allocation39_spill]]  ;;  %s1152_s20 = scalar_lea.sflag [#allocation5], %s2235_s24 }
  0x98   : > { %788 = vmatpush.bf16.msra.mxu2 %v1438_v26 }
  0x9b   : > { %1403 = vmatmul.msk.bf16.vlgmr.msra.gmra.mxu2 %vm705_vm0, %v684_v27 }
  0x9c   : > { %s1162_s18 = scalar_lea.hbm %s2439_s6, %s1431_s25 }
 0x114   : > { %v718_v10 = vpop.f32.mrf.mxu0  ;;  %v754_v11 = vpop.f32.mrf.mxu1 }
 0x115   : > { %v719_v12 = vadd.f32 %v1565_v8, %v718_v10  ;;  %v755_v13 = vadd.f32 %v1566_v9, %v754_v11  ;;  %v1567_v8 = vld [vmem:[%s2438_s4] ss:$0 sm:$0xff]  ;;  %s1876_s4 = scalar_lea.hbm %s2439_s6, 16 }
 0x117   : > { %v794_v14 = vpack.c.bf16 %v719_v12, %v719_v12  ;;  %v831_v15 = vmul.f32 0.35355338, %v719_v12  ;;  %v833_v16 = vpack.c.bf16 %v755_v13, %v755_v13 }
 0x119   : > { %v832_v17 = vpack.c.bf16 %v831_v15, %v831_v15  ;;  %v899_v18 = vunpack.c.l.b16 %v833_v16  ;;  %1412 = vmatmul.msk.bf16.vlgmr.msra.gmra.mxu3 %vm705_vm0, %v794_v14  ;;  %v844_v19 = vsel %vm839_vm1, %v833_v16, 0 }
 0x11a   : > { %853 = vmatpush.bf16.xpose.msrb.mxu0 %v844_v19 }
 0x11b   : > { %v900_v20 = vpack.c.b16 %v899_v18, %v899_v18  ;;  %v894_v23 = vunpack.c.l.b16 %v832_v17 }
 0x11c   : > { %v720_v21 = vpop.f32.mrf.mxu0  ;;  %v756_v22 = vpop.f32.mrf.mxu1 }
 0x11d   : > { %966 = vrot.lane.b32.xlu2 %v900_v20, %s1951_s1  ;;  %1027 = vrot.lane.b32.xlu1 %v900_v20, %s1952_s15  ;;  %v895_v24 = vpack.c.b16 %v894_v23, %v894_v23 }
 0x11e   : > { %901 = vrot.lane.b32.xlu0 %v900_v20, %s1953_s29  ;;  %v790_v48 = vpop.f32.mrf.mxu2 }
 0x11f   : > { %v791_v49 = vadd.f32 %v1568_v47, %v790_v48 }
 0x121   : > { %1413 = vmatmul.msk.bf16.vlgmr.msrb.gmra.mxu0 %vm839_vm1, %v832_v17  ;;  %v834_v50 = vpack.c.bf16 %v791_v49, %v791_v49 }
 0x123   : > { %v876_v51 = vsel %vm874_vm3, %v834_v50, 0  ;;  %v935_v6 = vunpack.c.l.b16 %v834_v50 }
 0x124   : > { %885 = vmatpush.bf16.msrb.mxu1 %v876_v51 }
 0x125   : > { %964 = vrot.lane.b32.xlu2 %v895_v24, %s1951_s1  ;;  %1025 = vrot.lane.b32.xlu1 %v895_v24, %s1952_s15  ;;  %v936_v7 = vpack.c.b16 %v935_v6, %v935_v6  ;;  %v1443_v6 = vld [vmem:[#allocation17 + $0x8] sm:$0xff] }
 0x126   : > { %896 = vrot.lane.b32.xlu0 %v895_v24, %s1953_s29  ;;  %v792_v52 = vpop.f32.mrf.mxu2 }
 0x177   : > { %v967_v28 = vpop.permute.xlu2 %966 }
 0x178   : > { %v972_v29 = vsel %vm839_vm1, %v967_v28, 0 }
 0x179   : > { %981 = vmatpush.bf16.xpose.msra.mxu0 %v972_v29 }
 0x17f   : > { %v965_v30 = vpop.permute.xlu2 %964 }
 0x180   : > { %1417 = vmatmul.msk.bf16.vlgmr.msra.gmra.mxu0 %vm839_vm1, %v965_v30 }
 0x181   : > { %1143 = vmatpush.bf16.msrb.mxu0 %v1443_v6 }
 0x18f   : > { %v1028_v31 = vpop.permute.xlu1 %1027 }
 0x190   : > { %v1033_v32 = vsel %vm839_vm1, %v1028_v31, 0  ;;  %v902_v33 = vpop.permute.xlu0 %901 }
 0x191   : > { %v907_v34 = vsel %vm839_vm1, %v902_v33, 0 }
 0x192   : > { %916 = vmatpush.bf16.xpose.msrb.mxu2 %v907_v34 }
 0x197   : > { %v1026_v46 = vpop.permute.xlu1 %1025 }
 0x198   : > { %v897_v37 = vpop.permute.xlu0 %896 }
 0x199   : > { %1415 = vmatmul.msk.bf16.vlgmr.msrb.gmra.mxu2 %vm839_vm1, %v897_v37 }
 0x19a   : > { %1042 = vmatpush.bf16.xpose.msra.mxu2 %v1033_v32 }
 0x19c   : > { %v827_v38 = vpop.f32.mrf.mxu3 }
 0x19d   : > { %v2312_v9 = vadd.f32 %v1567_v8, %v827_v38 }
 0x19e   : > { %v855_v41 = vpop.f32.mrf.mxu0 }
 0x19f   : > { %v856_v42 = vadd.f32 %v855_v41, %v838_v40 }
 0x1a1   : > { %v859_v43 = vsel %vm839_vm1, %v856_v42, -inf }
 0x1a2   : > { %860 = vmax.xlane.f32.xlu1 %v859_v43 }
 0x1a4   : > { %v829_v44 = vpop.f32.mrf.mxu3 }
 0x1a6   : > { %v857_v45 = vpop.f32.mrf.mxu0 }
 0x1a9   : > { %1419 = vmatmul.msk.bf16.vlgmr.msra.gmra.mxu2 %vm839_vm1, %v1026_v46 }
 0x1fd   : > { %v983_v53 = vpop.f32.mrf.mxu0 }
 0x1fe   : > { %v984_v3 = vadd.f32 %v983_v53, %v838_v40 }
 0x200   : > { %v987_v5 = vsel %vm839_vm1, %v984_v3, -inf }
 0x205   : > { %v985_v54 = vpop.f32.mrf.mxu0 }
 0x215   : > { %v861_v55 = vpop.xlane.xlu1 %860 }
 0x216   : > { %v862_v56 = vsub.f32 %v856_v42, %v861_v55 }
 0x218   : > { %v863_v57 = vmul.f32 1.442695, %v862_v56 }
 0x21a   : > { %1570 = vpow2.f32 %v863_v57 }
 0x21c   : > { %v918_v58 = vpop.f32.mrf.mxu2 }
 0x21d   : > { %v919_v59 = vadd.f32 %v918_v58, %v838_v40 }
 0x21f   : > { %v922_v60 = vsel %vm839_vm1, %v919_v59, -inf }
 0x220   : > { %v1571_v61 = vpop.eup %1570  ;;  %923 = vmax.xlane.f32.xlu0 %v922_v60 }
 0x221   : > { %v865_v62 = vsel %vm839_vm1, %v1571_v61, 0.0 }
 0x222   : > { %866 = vadd.xlane.f32.xlu1 %v865_v62 }
 0x224   : > { %v920_v63 = vpop.f32.mrf.mxu2 }
 0x22c   : > { %v1044_v0 = vpop.f32.mrf.mxu2 }
 0x22d   : > { %v1045_v1 = vadd.f32 %v1044_v0, %v838_v40 }
 0x22f   : > { %v1048_v2 = vsel %vm839_vm1, %v1045_v1, -inf }
 0x230   : > { %1049 = vmax.xlane.f32.xlu2 %v1048_v2 }
 0x234   : > { %v1046_v4 = vpop.f32.mrf.mxu2 }
 0x238   : > { %988 = vmax.xlane.f32.xlu2 %v987_v5 }
 0x250   : > { %937 = vrot.lane.b32.xlu2 %v936_v7, %s1953_s29 }
 0x258   : > { %959 = vrot.lane.b32.xlu2 %v2312_v9, %s1953_s29  ;;  %s1166_s29 = sshll.u32 %s1162_s18, 4  ;;  %s1167_s29 = int_to_ptr.hbm [resolvable:$true] %s1166_s29 }
 0x259   : > { %s1870_s14 = sshra.s32 %s1167_s29, 4  ;;  %s1871_s14 = int_to_ptr.hbm [resolvable:$true] %s1870_s14 }
 0x25a   : > { %s1872_s27 = scalar_lea.hbm %s1871_s14, 8  ;;  %p1877_p10 = scmp.lt.s32.totalorder %s1871_s14, %s2439_s6 }
 0x25b   : > { %p1873_p13 = scmp.ne.s32.totalorder %s1871_s14, %s1872_s27  ;;  %p1878_p6 = scmp.lt.s32.totalorder %s1876_s4, %s1872_s27 }
 0x25d   : > { %p1874_p1 = pnand %p1873_p13, %p2118_p0  ;;  %p1879_p11 = por %p1878_p6, %p1877_p10 }
 0x25f   : > { %p1875_p7 = pneg %p1874_p1 }
 0x260   : > { %1081 = vrot.lane.b32.xlu2 %v2312_v9, %s1952_s15 }
 0x261   : > { %p1880_p3 = pnand %p1879_p11, %p1875_p7 }
 0x293   : > { %v924_v10 = vpop.xlane.xlu0 %923 }
 0x294   : > { %v925_v11 = vsub.f32 %v919_v59, %v924_v10 }
 0x295   : > { %v867_v12 = vpop.xlane.xlu1 %866 }
 0x296   : > { %v926_v13 = vmul.f32 1.442695, %v925_v11  ;;  %1572 = vrcp.f32 %v867_v12 }
 0x298   : > { %1574 = vpow2.f32 %v926_v13 }
 0x29c   : > { %v1573_v14 = vpop.eup %1572 }
 0x29d   : > { %v869_v15 = vmul.f32 %v1573_v14, %v1571_v61 }
 0x29e   : > { %v1575_v16 = vpop.eup %1574 }
 0x29f   : > { %v928_v17 = vsel %vm839_vm1, %v1575_v16, 0.0  ;;  %v870_v18 = vpack.c.bf16 %v869_v15, %v869_v15 }
 0x2a0   : > { %929 = vadd.xlane.f32.xlu0 %v928_v17 }
 0x2a1   : > { %1414 = vmatmul.msk.bf16.vlgmr.msrb.gmra.mxu1 %vm839_vm1, %v870_v18 }
 0x2a3   : > { %v1050_v19 = vpop.xlane.xlu2 %1049 }
 0x2a4   : > { %v1051_v20 = vsub.f32 %v1045_v1, %v1050_v19 }
 0x2a6   : > { %v1052_v21 = vmul.f32 1.442695, %v1051_v20 }
 0x2a8   : > { %1576 = vpow2.f32 %v1052_v21 }
 0x2ab   : > { %v989_v22 = vpop.xlane.xlu2 %988 }
 0x2ac   : > { %v990_v23 = vsub.f32 %v984_v3, %v989_v22 }
 0x2ae   : > { %v1577_v24 = vpop.eup %1576  ;;  %v991_v25 = vmul.f32 1.442695, %v990_v23 }
 0x2af   : > { %v1054_v26 = vsel %vm839_vm1, %v1577_v24, 0.0 }
 0x2b0   : > { %1578 = vpow2.f32 %v991_v25  ;;  %1055 = vadd.xlane.f32.xlu0 %v1054_v26 }
 0x2b3   : > { %v938_v27 = vpop.permute.xlu2 %937 }
 0x2b4   : > { %v943_v28 = vsel %vm874_vm3, %v938_v27, 0 }
 0x2b5   : > { %952 = vmatpush.bf16.msrb.mxu3 %v943_v28 }
 0x2b6   : > { %v1579_v29 = vpop.eup %1578 }
 0x2b7   : > { %v993_v30 = vsel %vm839_vm1, %v1579_v29, 0.0 }
 0x2b8   : > { %994 = vadd.xlane.f32.xlu1 %v993_v30 }
 0x2bb   : > { %v960_v49 = vpop.permute.xlu2 %959 }
 0x2c3   : > { %v1082_v56 = vpop.permute.xlu2 %1081 }
 0x2c4   : > { %1060 = vrot.lane.b32.xlu0 %v936_v7, %s1952_s15 }
 0x2cc   : > { %1020 = vrot.lane.b32.xlu0 %v2312_v9, %s1951_s1 }
 0x2d1   : > { %999 = vrot.lane.b32.xlu1 %v936_v7, %s1951_s1  ;;  %v1442_v7 = vld [vmem:[#allocation17] sm:$0xff]  ;;  %s680_s1 = scalar_lea.vmem [#allocation18], %s1376_s17 }
 0x2d2   : > { %1144 = vmatpush.bf16.msrb.mxu0 %v1442_v7  ;;  %s1164_s15 = sshll.u32 %s680_s1, 4  ;;  %s1165_s15 = int_to_ptr.vmem [resolvable:$true] %s1164_s15 }
 0x313   : > { %v930_v31 = vpop.xlane.xlu0 %929 }
 0x314   : > { %1580 = vrcp.f32 %v930_v31 }
 0x31a   : > { %v1581_v32 = vpop.eup %1580 }
 0x31b   : > { %v932_v33 = vmul.f32 %v1581_v32, %v1575_v16 }
 0x31d   : > { %v933_v34 = vpack.c.bf16 %v932_v33, %v932_v33 }
 0x31e   : > { %v887_v35 = vpop.f32.mrf.mxu1 }
 0x31f   : > { %1416 = vmatmul.msk.bf16.vlgmr.msrb.gmra.mxu3 %vm839_vm1, %v933_v34  ;;  %v891_v8 = vmul.f32 %v887_v35, %v2312_v9  ;;  %v1569_v9 = vld [vmem:[%s2441_s13] ss:$0 sm:$0xff] }
 0x321   : > { %v892_v11 = vpack.c.bf16 %v891_v8, %v891_v8 }
 0x323   : > { %v1056_v37 = vpop.xlane.xlu0 %1055 }
 0x324   : > { %1582 = vrcp.f32 %v1056_v37 }
 0x326   : > { %v889_v36 = vpop.f32.mrf.mxu1 }
 0x32a   : > { %v1583_v38 = vpop.eup %1582 }
 0x32b   : > { %v1058_v39 = vmul.f32 %v1583_v38, %v1577_v24  ;;  %v995_v40 = vpop.xlane.xlu1 %994 }
 0x32c   : > { %1584 = vrcp.f32 %v995_v40 }
 0x32d   : > { %v1059_v43 = vpack.c.bf16 %v1058_v39, %v1058_v39 }
 0x332   : > { %v1585_v44 = vpop.eup %1584 }
 0x333   : > { %v997_v45 = vmul.f32 %v1585_v44, %v1579_v29 }
 0x335   : > { %v998_v48 = vpack.c.bf16 %v997_v45, %v997_v45 }
 0x336   : > { %v1061_v41 = vpop.permute.xlu0 %1060 }
 0x337   : > { %v1066_v42 = vsel %vm874_vm3, %v1061_v41, 0 }
 0x338   : > { %1075 = vmatpush.bf16.msra.mxu3 %v1066_v42 }
 0x33b   : > { %1420 = vmatmul.msk.bf16.vlgmr.msra.gmra.mxu3 %vm839_vm1, %v1059_v43 }
 0x33e   : > { %v1021_v61 = vpop.permute.xlu0 %1020 }
 0x343   : > { %v1000_v46 = vpop.permute.xlu1 %999 }
 0x344   : > { %v1005_v47 = vsel %vm874_vm3, %v1000_v46, 0 }
 0x345   : > { %1014 = vmatpush.bf16.msra.mxu1 %v1005_v47 }
 0x348   : > { %1418 = vmatmul.msk.bf16.vlgmr.msra.gmra.mxu1 %vm839_vm1, %v998_v48 }
 0x3a2   : > { %v954_v50 = vpop.f32.mrf.mxu3 }
 0x3a3   : > { %v962_v51 = vmul.f32 %v960_v49, %v954_v50 }
 0x3a5   : > { %v963_v52 = vpack.c.bf16 %v962_v51, %v962_v51 }
 0x3a7   : > { %v1087_v53 = vunpack.c.l.b16 %v963_v52 }
 0x3a9   : > { %v1088_v54 = vpack.c.b16 %v1087_v53, %v1087_v53 }
 0x3aa   : > { %v956_v55 = vpop.f32.mrf.mxu3 }
 0x3ab   : > { %1089 = vrot.lane.b32.xlu1 %v1088_v54, %s1955_s22 }
 0x3be   : > { %v1077_v57 = vpop.f32.mrf.mxu3 }
 0x3bf   : > { %v1084_v58 = vmul.f32 %v1082_v56, %v1077_v57 }
 0x3c1   : > { %v1085_v59 = vpack.c.bf16 %v1084_v58, %v1084_v58 }
 0x3c3   : > { %v1097_v60 = vunpack.c.l.b16 %v1085_v59 }
 0x3c5   : > { %v1098_v62 = vpack.c.b16 %v1097_v60, %v1097_v60  ;;  %v1016_v63 = vpop.f32.mrf.mxu1 }
 0x3c6   : > { %v1023_v0 = vmul.f32 %v1021_v61, %v1016_v63  ;;  %v1079_v1 = vpop.f32.mrf.mxu3 }
 0x3c7   : > { %1099 = vrot.lane.b32.xlu2 %v1098_v62, %s1956_s28 }
 0x3c8   : > { %v1024_v2 = vpack.c.bf16 %v1023_v0, %v1023_v0 }
 0x3ca   : > { %v1092_v3 = vunpack.c.l.b16 %v1024_v2 }
 0x3cc   : > { %v1093_v4 = vpack.c.b16 %v1092_v3, %v1092_v3 }
 0x3cd   : > { %v1018_v5 = vpop.f32.mrf.mxu1 }
 0x3ce   : > { %1094 = vrot.lane.b32.xlu0 %v1093_v4, %s1957_s21 }
 0x41d   : > { %v1090_v10 = vpop.permute.xlu1 %1089 }
 0x41e   : > { %v1103_v12 = vsel %vm839_vm1, %v892_v11, %v1090_v10 }
 0x421   : > { %v1100_v14 = vpop.permute.xlu2 %1099 }
 0x440   : > { %v1095_v13 = vpop.permute.xlu0 %1094 }
 0x441   : > { %v1106_v15 = vsel %vm1104_vm4, %v1103_v12, %v1095_v13 }
 0x442   : > { %v1109_v16 = vsel %vm1107_vm5, %v1106_v15, %v1100_v14 }
 0x443   : > { %1112 = vst.msk [vmem:[#allocation2] sm:$0xf] %vm1111_vm6, %v1109_v16 }
 0x44a   : > { %v1113_v17 = vld [vmem:[#allocation2] sm:$0xf] }
 0x44b   : > { %1429 = vmatmul.msk.bf16.vlgmr.msrb.gmra.mxu0 %vm705_vm0, %v1113_v17 }
 0x4c8   : > { %v1146_v18 = vpop.f32.mrf.mxu0 }
 0x4c9   : > { %v1147_v19 = vadd.f32 %v1569_v9, %v1146_v18 }
 0x4cb   : > { %1150 = vst.msk [vmem:[%s680_s1] sm:$0xff] %vm705_vm0, %v1147_v19 }
 0x4cc   : > { %1883 = shalt.err (!%p1880_p3)
}
 0x4cd   : > { %1472 = dma.vmem_to_hbm [thread:$0]  (%p2118_p0), %s1165_s15, 128, %s1167_s29, %s1152_s20  }
 0x4d0   : > { %v1148_v20 = vpop.f32.mrf.mxu0 }
 0x4d1 PF: > { %s2442_s24 = sld [smem:[#allocation26_spill]]  ;;  %p2444_p8 = scmp.ge.s32.totalorder %s1942_s16, 2 }
 0x4d3   : > { %p1504_p9 = pnand %p2444_p8, %p2126_p5 }
 0x4d5   : > { %p1505_p12 = pneg %p1504_p9 }
 0x4d7   : > { %s1178_s25 = sand.u32 1, %s2442_s24  }
 0x4d8   : > { %s1179_s17 = scalar_lea.sflag [#allocation5], %s1178_s25 }
 0x4d9   : > { %1925 = dma.done.wait (%p1505_p12), %s1179_s17, 128  }
 0x4da   : > { %1927 = vsyncadd (%p1505_p12), %s1179_s17, 4294967168  ;;  %s2445_s16 = sld [smem:[#allocation28_spill]]  ;;  %s2448_s29 = smov %s1934_s30 }
 0x4db   : > { %s2446_s26 = sld [smem:[#allocation27_spill]] }
 0x4dc   : > { %s2447_s15 = sld [smem:[#allocation29_spill]] }
 0x4e0   : > { %p35_p2 = scmp.ge.s32.totalorder %s2445_s16, 4  }
 0x4e1   : > { %s2449_s30 = smov %s2446_s26 }
 0x4e2   :  { %37 = sbr.rel (!%p35_p2) target bundleno = 21 (0x15), region = 178 }
 0x4e7   :  { %1185 = vsyncpa [#allocation4], 1 }
 0x4e8   :  { %1187 = vsyncpa [#allocation4 + $0x1], 1 }
 0x4e9   :  { %1188 = vsyncpa [#allocation7], 1 }
 0x4ea   :  { %1190 = vsyncpa [#allocation7 + $0x1], 1 }
 0x4eb   :  { %1191 = vsyncpa [#allocation10], 1 }
 0x4ec   :  { %1193 = vsyncpa [#allocation10 + $0x1], 1 }
 0x4ed   :  { %1194 = vsyncpa [#allocation13], 1 }
 0x4ee   :  { %1195 = vsyncpa [#allocation16], 1 }
 0x4ef   :  { %1196 = vsyncpa [#allocation5], 1 }
 0x4f0   :  { %1198 = vsyncpa [#allocation5 + $0x1], 1 }

// kernel: tpu_custom_call.1
= control target key start
LH: loop header
LB: loop body
LE: loop exit
PB: predicated region body
PF: predicated region fallthrough
CT: control target
= control target key end

     0   :  { %s2373_s0 = inlined_call_operand.hbm [shape: bf16[2,8,32], index: 0, kind: input, shape index: {}]   ;;  %s2374_s1 = inlined_call_operand.hbm [shape: bf16[2,8,32], index: 1, kind: input, shape index: {}]   ;;  %s2375_s2 = inlined_call_operand.hbm [shape: bf16[2,8,32], index: 2, kind: input, shape index: {}]   ;;  %s2376_s3 = inlined_call_operand.hbm [shape: s8[2,8,8], index: 3, kind: input, shape index: {}]   ;;  %s2377_s4 = inlined_call_operand.hbm [shape: bf16[32,32], index: 4, kind: input, shape index: {}]   ;;  %s2378_s5 = inlined_call_operand.vmem [shape: f32[1,32], index: 5, kind: input, shape index: {}]   ;;  %s2379_s6 = inlined_call_operand.hbm [shape: bf16[32,32], index: 6, kind: input, shape index: {}]   ;;  %s2380_s7 = inlined_call_operand.vmem [shape: f32[1,32], index: 7, kind: input, shape index: {}]   ;;  %s2381_s8 = inlined_call_operand.hbm [shape: bf16[32,32], index: 8, kind: input, shape index: {}]   ;;  %s2382_s9 = inlined_call_operand.vmem [shape: f32[1,32], index: 9, kind: input, shape index: {}]   ;;  %s2383_s10 = inlined_call_operand.hbm [shape: bf16[32,32], index: 10, kind: input, shape index: {}]   ;;  %s2384_s11 = inlined_call_operand.vmem [shape: f32[1,32], index: 11, kind: input, shape index: {}]   ;;  %s2385_s12 = inlined_call_operand.hbm [shape: bf16[32,32], index: 12, kind: input, shape index: {}]   ;;  %s2386_s13 = inlined_call_operand.vmem [shape: f32[1,32], index: 13, kind: input, shape index: {}]   ;;  %s2387_s14 = inlined_call_operand.hbm [shape: f32[2,8,32], index: 14, kind: output, shape index: {}]  }
   0x1   :  { %2402 = sst [smem:[#allocation32_spill]] %s2374_s1 }
   0x2   :  { %2403 = sst [smem:[#allocation33_spill]] %s2377_s4 }
   0x3   :  { %2404 = sst [smem:[#allocation34_spill]] %s2379_s6 }
   0x4   :  { %2405 = sst [smem:[#allocation35_spill]] %s2381_s8 }
   0x5   :  { %2406 = sst [smem:[#allocation36_spill]] %s2383_s10 }
   0x6   :  { %2407 = sst [smem:[#allocation37_spill]] %s2384_s11 }
   0x7   :  { %2408 = sst [smem:[#allocation38_spill]] %s2385_s12 }
   0x8   :  { %2409 = sst [smem:[#allocation39_spill]] %s2386_s13 }
   0x9   :  { %2410 = sst [smem:[#allocation40_spill]] %s2387_s14 }
   0xa   :  { %19 = vsyncpa [#allocation4], 0 }
   0xb   :  { %21 = vsyncpa [#allocation4 + $0x1], 0 }
   0xc   :  { %22 = vsyncpa [#allocation7], 0 }
   0xd   :  { %24 = vsyncpa [#allocation7 + $0x1], 0 }
   0xe   :  { %25 = vsyncpa [#allocation10], 0 }
   0xf   :  { %27 = vsyncpa [#allocation10 + $0x1], 0 }
  0x10   :  { %28 = vsyncpa [#allocation13], 0 }
  0x11   :  { %29 = vsyncpa [#allocation16], 0 }
  0x12   :  { %30 = vsyncpa [#allocation5], 0 }
  0x13   :  { %32 = vsyncpa [#allocation5 + $0x1], 0  ;;  %s2033_s29 = smov 0   ;;  %s2035_s30 = smov 0  }
  0x14   :  { %s2037_s15 = smov 0   ;;  %s2039_s16 = smov 0  }
  0x15 LB: > { %2411 = sst [smem:[#allocation26_spill]] %s1930_s29  ;;  %s2057_s20 = sadd.s32 4294967295, %s1942_s16   ;;  %s1942_s16 = sphi %s2039_s16, %s2445_s16   ;;  %s1938_s15 = sphi %s2037_s15, %s2447_s15   ;;  %s1934_s30 = sphi %s2035_s30, %s2449_s30   ;;  %s1930_s29 = sphi %s2033_s29, %s2448_s29  }
  0x16   : > { %2412 = sst [smem:[#allocation27_spill]] %s1938_s15  ;;  %p1351_p0 = scmp.ge.s32.totalorder %s1942_s16, 1 }
  0x17   : > { %s2413_s4 = sld [smem:[#allocation33_spill]]  ;;  %p2400_p1 = scmp.eq.s32.totalorder %s2057_s20, 0 }
  0x18   : > { %p383_p2 = scmp.lt.s32.totalorder %s1942_s16, 3  ;;  %s1944_s22 = smov [#allocation11]  }
  0x19   : > { %s396_s23 = sshll.u32 %s1944_s22, 4  ;;  %s2415_s6 = sld [smem:[#allocation34_spill]]  ;;  %s397_s23 = int_to_ptr.vmem [resolvable:$true] %s396_s23 }
  0x1a   : > { %p2062_p3 = pnand %p1351_p0, %p383_p2  ;;  %s2417_s10 = sld [smem:[#allocation36_spill]] }
  0x1b   : > { %s1945_s22 = smov [#allocation12]   ;;  %s2388_s25 = smov 64  }
  0x1c   : > { %p1474_p4 = pneg %p2062_p3  ;;  %s413_s24 = sshll.u32 %s1945_s22, 4  ;;  %s414_s24 = int_to_ptr.vmem [resolvable:$true] %s413_s24 }
  0x1d   : > { %s394_s19 = sshll.u32 %s2413_s4, 4  ;;  %s2390_s4 = smov 4   ;;  %s395_s19 = int_to_ptr.hbm [resolvable:$true] %s394_s19 }
  0x1e   : > { %p2074_p6 = pnand %p1474_p4, %p2400_p1  ;;  %s1948_s28 = smov [#allocation15]  }
  0x1f   : > { %s411_s26 = sshll.u32 %s2415_s6, 4  ;;  %s447_s17 = sshll.u32 %s1948_s28, 4  ;;  %s412_s26 = int_to_ptr.hbm [resolvable:$true] %s411_s26  ;;  %s448_s17 = int_to_ptr.vmem [resolvable:$true] %s447_s17 }
  0x20   : > { %s445_s18 = sshll.u32 %s2417_s10, 4  ;;  %s45_s22 = sadd.s32 1, %s1938_s15  ;;  %s446_s18 = int_to_ptr.hbm [resolvable:$true] %s445_s18 }
  0x21   : > { %1477 = dma.hbm_to_vmem [thread:$0]  (!%p2074_p6), %s395_s19, 256, %s397_s23, [#allocation10], %s2388_s25, %s2388_s25, %s2390_s4  }
  0x22   : > { %1480 = dma.hbm_to_vmem [thread:$0]  (!%p2074_p6), %s412_s26, 256, %s414_s24, [#allocation13], %s2388_s25, %s2388_s25, %s2390_s4  }
  0x23   : > { %1486 = dma.hbm_to_vmem [thread:$0]  (!%p2074_p6), %s446_s18, 256, %s448_s17, [#allocation16], %s2388_s25, %s2388_s25, %s2390_s4  }
  0x24   : > { %s1350_s19 = sadd.s32 4294967294, %s1942_s16   ;;  %s2098_s23 = sadd.s32 1, %s1942_s16  }
  0x25   : > { %2418 = sst [smem:[#allocation28_spill]] %s2098_s23  ;;  %s42_s6 = ssub.s32 %s1942_s16, %s2098_s23 }
  0x26   : > { %p52_p7 = scmp.ne.s32.totalorder %s1938_s15, %s1934_s30  ;;  %p43_p8 = scmp.eq.s32.totalorder %s42_s6, 0 }
  0x27   : > { %p53_p9 = scmp.eq.s32.totalorder %s1942_s16, 0  ;;  %p58_p10 = scmp.ne.s32.totalorder %s1934_s30, %s1930_s29 }
  0x28   : > { %p370_p11 = scmp.eq.s32.totalorder %s2057_s20, 1  ;;  %p376_p2 = scmp.eq.s32.totalorder %s1350_s19, 1 }
  0x29   : > { %s2110_s26 = scalar_select %p43_p8, %s1938_s15, %s45_s22  }
  0x2a   : > { %p54_p12 = por %p53_p9, %p52_p7  ;;  %p2114_p13 = por %p2400_p1, %p58_p10 }
  0x2b   : > { %2419 = sst [smem:[#allocation29_spill]] %s2110_s26  ;;  %p2118_p0 = por %p370_p11, %p52_p7 }
  0x2c   : > { %p1512_p4 = scmp.lt.s32.totalorder %s1942_s16, 2  ;;  %s2124_s28 = sand.u32 1, %s1938_s15  }
  0x2d   : > { %s2421_s24 = scalar_select %p2118_p0, 1, 0 }
  0x2e   : > { %p2126_p5 = por %p376_p2, %p58_p10  ;;  %s2131_s17 = sshll.u32 %s2124_s28, 2 }
  0x2f   : > { %2422 = sst [smem:[#allocation30_spill]] %s2421_s24  ;;  %s2134_s22 = sshll.u32 %s1942_s16, 2 }
  0x30   : > { %s2423_s6 = scalar_select %p2126_p5, 1, 0 }
  0x31   : > { %p2136_p8 = pnand %p1512_p4, %p54_p12  ;;  %s2401_s19 = sand.u32 1, %s1942_s16  }
  0x32   : > { %2424 = sst [smem:[#allocation31_spill]] %s2423_s6  ;;  %s504_s15 = scalar_lea.vmem [#allocation6], %s2131_s17 }
  0x33   : > { %s2426_s1 = sld [smem:[#allocation32_spill]]  ;;  %s512_s23 = sshll.u32 %s504_s15, 4  ;;  %s513_s23 = int_to_ptr.vmem [resolvable:$true] %s512_s23 }
  0x34   : > { %s2148_s29 = scalar_lea.sflag [#allocation7], %s2401_s19  ;;  %p1680_p9 = pneg %p2136_p8 }
  0x39   : > { %s508_s26 = scalar_lea.hbm %s2426_s1, %s2134_s22  ;;  %s1683_s15 = scalar_lea.hbm %s2426_s1, 8 }
  0x3a   : > { %s510_s6 = sshll.u32 %s508_s26, 4  ;;  %s511_s6 = int_to_ptr.hbm [resolvable:$true] %s510_s6 }
  0x3b   : > { %s1676_s13 = sshra.s32 %s511_s6, 4  ;;  %s1677_s13 = int_to_ptr.hbm [resolvable:$true] %s1676_s13 }
  0x3c   : > { %s1678_s24 = scalar_lea.hbm %s1677_s13, 4  ;;  %p1684_p12 = scmp.lt.s32.totalorder %s1677_s13, %s2426_s1 }
  0x3d   : > { %p1679_p7 = scmp.ne.s32.totalorder %s1677_s13, %s1678_s24  ;;  %p1685_p2 = scmp.lt.s32.totalorder %s1683_s15, %s1678_s24 }
  0x3f   : > { %p1681_p10 = pnand %p1680_p9, %p1679_p7  ;;  %p1686_p4 = por %p1685_p2, %p1684_p12 }
  0x41   : > { %p1682_p11 = pneg %p1681_p10 }
  0x43   : > { %p1687_p1 = pnand %p1686_p4, %p1682_p11 }
  0x45   : > { %1690 = shalt.err (!%p1687_p1)
}
  0x46   : > { %1496 = dma.hbm_to_vmem [thread:$0]  (!%p2136_p8), %s511_s6, 64, %s513_s23, %s2148_s29  }
  0x47   : > { %s2427_s8 = sld [smem:[#allocation35_spill]]  ;;  %s1949_s10 = smov [#allocation14]  }
  0x48   : > { %s430_s13 = sshll.u32 %s1949_s10, 4  ;;  %s2428_s12 = sld [smem:[#allocation38_spill]]  ;;  %s431_s13 = int_to_ptr.vmem [resolvable:$true] %s430_s13 }
  0x49   : > { %s2429_s26 = smov 4   ;;  %s2430_s1 = smov 64  }
  0x4a   : > { %s1950_s23 = smov [#allocation17]   ;;  %s489_s10 = scalar_lea.hbm %s2373_s0, %s2134_s22 }
  0x4b   : > { %s464_s6 = sshll.u32 %s1950_s23, 4  ;;  %s485_s14 = scalar_lea.vmem [#allocation3], %s2131_s17  ;;  %s465_s6 = int_to_ptr.vmem [resolvable:$true] %s464_s6 }
  0x4c   : > { %s493_s24 = sshll.u32 %s485_s14, 4  ;;  %s494_s24 = int_to_ptr.vmem [resolvable:$true] %s493_s24 }
  0x4d   : > { %s428_s4 = sshll.u32 %s2427_s8, 4  ;;  %s491_s8 = sshll.u32 %s489_s10, 4  ;;  %s429_s4 = int_to_ptr.hbm [resolvable:$true] %s428_s4  ;;  %s492_s8 = int_to_ptr.hbm [resolvable:$true] %s491_s8 }
  0x4e   : > { %s462_s15 = sshll.u32 %s2428_s12, 4  ;;  %s463_s15 = int_to_ptr.hbm [resolvable:$true] %s462_s15 }
  0x4f   : > { %1483 = dma.hbm_to_vmem [thread:$0]  (!%p2074_p6), %s429_s4, 256, %s431_s13, [#allocation13], %s2430_s1, %s2430_s1, %s2429_s26  }
  0x50   : > { %1489 = dma.hbm_to_vmem [thread:$0]  (!%p2074_p6), %s463_s15, 256, %s465_s6, [#allocation16], %s2430_s1, %s2430_s1, %s2429_s26  }
  0x51   : > { %s482_s4 = scalar_lea.sflag [#allocation4], %s2124_s28  ;;  %s1766_s13 = sshra.s32 %s492_s8, 4  ;;  %s1767_s13 = int_to_ptr.hbm [resolvable:$true] %s1766_s13 }
  0x52   : > { %s1768_s12 = scalar_lea.hbm %s1767_s13, 4  ;;  %s1773_s15 = scalar_lea.hbm %s2373_s0, 8 }
  0x53   : > { %p1769_p1 = scmp.ne.s32.totalorder %s1767_s13, %s1768_s12  ;;  %p1774_p6 = scmp.lt.s32.totalorder %s1767_s13, %s2373_s0 }
  0x54   : > { %p1775_p11 = scmp.lt.s32.totalorder %s1773_s15, %s1768_s12 }
  0x55   : > { %p1771_p7 = pnand %p1769_p1, %p1680_p9 }
  0x56   : > { %p1776_p12 = por %p1775_p11, %p1774_p6 }
  0x57   : > { %p1772_p10 = pneg %p1771_p7 }
  0x59   : > { %p1777_p2 = pnand %p1776_p12, %p1772_p10 }
  0x5b   : > { %1780 = shalt.err (!%p1777_p2)
}
  0x5c   : > { %1493 = dma.hbm_to_vmem [thread:$0]  (!%p2136_p8), %s492_s8, 64, %s494_s24, %s482_s4  }
  0x5d   : > { %s527_s19 = scalar_lea.hbm %s2375_s2, %s2134_s22  ;;  %s523_s10 = scalar_lea.vmem [#allocation8], %s2131_s17 }
  0x5e   : > { %s531_s14 = sshll.u32 %s523_s10, 4  ;;  %s529_s27 = sshll.u32 %s527_s19, 4  ;;  %s532_s14 = int_to_ptr.vmem [resolvable:$true] %s531_s14  ;;  %s530_s27 = int_to_ptr.hbm [resolvable:$true] %s529_s27 }
  0x5f   : > { %s1364_s12 = sshll.u32 %s2124_s28, 1  ;;  %s1796_s13 = sshra.s32 %s530_s27, 4  ;;  %s1797_s13 = int_to_ptr.hbm [resolvable:$true] %s1796_s13 }
  0x60   : > { %s1798_s1 = scalar_lea.hbm %s1797_s13, 4  ;;  %s1803_s24 = scalar_lea.hbm %s2375_s2, 8 }
  0x61   : > { %p1799_p4 = scmp.ne.s32.totalorder %s1797_s13, %s1798_s1  ;;  %p1804_p10 = scmp.lt.s32.totalorder %s1797_s13, %s2375_s2 }
  0x62   : > { %p1805_p6 = scmp.lt.s32.totalorder %s1803_s24, %s1798_s1 }
  0x63   : > { %p1801_p1 = pnand %p1799_p4, %p1680_p9 }
  0x64   : > { %p1806_p11 = por %p1805_p6, %p1804_p10 }
  0x65   : > { %p1802_p7 = pneg %p1801_p1 }
  0x67   : > { %p1807_p12 = pnand %p1806_p11, %p1802_p7 }
  0x69   : > { %1810 = shalt.err (!%p1807_p12)
}
  0x6a   : > { %1499 = dma.hbm_to_vmem [thread:$0]  (!%p2136_p8), %s530_s27, 64, %s532_s14, %s2148_s29  }
  0x6b   : > { %s1365_s28 = sshll.u32 %s1942_s16, 1  ;;  %s542_s6 = scalar_lea.vmem [#allocation9], %s1364_s12 }
  0x6c   : > { %s546_s23 = scalar_lea.hbm %s2376_s3, %s1365_s28  ;;  %s550_s11 = sshll.u32 %s542_s6, 4  ;;  %s551_s11 = int_to_ptr.vmem [resolvable:$true] %s550_s11 }
  0x6d   : > { %s548_s19 = sshll.u32 %s546_s23, 4  ;;  %s2431_s10 = sand.u32 1, %s1942_s16   ;;  %s549_s19 = int_to_ptr.hbm [resolvable:$true] %s548_s19 }
  0x6e   : > { %s539_s13 = scalar_lea.sflag [#allocation10], %s2431_s10  ;;  %s1826_s1 = sshra.s32 %s549_s19, 4  ;;  %s1827_s1 = int_to_ptr.hbm [resolvable:$true] %s1826_s1 }
  0x6f   : > { %s1828_s15 = scalar_lea.hbm %s1827_s1, 2  ;;  %s1833_s27 = scalar_lea.hbm %s2376_s3, 4 }
  0x70   : > { %p1829_p2 = scmp.ne.s32.totalorder %s1827_s1, %s1828_s15  ;;  %p1834_p7 = scmp.lt.s32.totalorder %s1827_s1, %s2376_s3 }
  0x71   : > { %p1835_p10 = scmp.lt.s32.totalorder %s1833_s27, %s1828_s15 }
  0x72   : > { %p1831_p4 = pnand %p1829_p2, %p1680_p9 }
  0x73   : > { %p1836_p6 = por %p1835_p10, %p1834_p7 }
  0x74   : > { %p1832_p1 = pneg %p1831_p4 }
  0x76   : > { %p1837_p11 = pnand %p1836_p6, %p1832_p1 }
  0x78   : > { %1840 = shalt.err (!%p1837_p11)
}
  0x79   : > { %1502 = dma.hbm_to_vmem [thread:$0]  (!%p2136_p8), %s549_s19, 32, %s551_s11, %s539_s13  }
  0x7a   : > { %559 = sbr.rel (%p2062_p3) target bundleno = 1233 (0x4d1), region = 76  ;;  %s2235_s24 = sand.u32 (!%p2062_p3), 1, %s1934_s30  }
  0x7b   : > { %s2238_s4 = sshll.u32 (!%p2062_p3), %s2235_s24, 2  ;;  %s562_s22 = scalar_lea.sflag (!%p2062_p3), [#allocation4], %s2235_s24 }
  0x7c   : > { %s565_s28 = scalar_lea.vmem (!%p2062_p3), [#allocation3], %s2238_s4 }
  0x7f   : > { %1901 = dma.done.wait (%p2114_p13), %s562_s22, 64  }
  0x80   : > { %1903 = vsyncadd (%p2114_p13), %s562_s22, 4294967232  ;;  %s571_s21 = sand.u32 1, %s2057_s20   ;;  %s575_s17 = scalar_lea.vmem [#allocation6], %s2238_s4 }
  0x81   : > { %s572_s25 = scalar_lea.sflag [#allocation7], %s571_s21 }
  0x82   : > { %1905 = dma.done.wait (%p2114_p13), %s572_s25, 128  }
  0x83   : > { %1907 = vsyncadd (%p2114_p13), %s572_s25, 4294967168  ;;  %s1370_s26 = sshll.u32 %s2235_s24, 1  ;;  %s585_s23 = scalar_lea.vmem [#allocation8], %s2238_s4 }
  0x84   : > { %s592_s6 = scalar_lea.sflag [#allocation10], %s571_s21  ;;  %s2254_s11 = scalar_lea.vmem [#allocation9], %s1370_s26 }
  0x85   : > { %1909 = dma.done.wait (%p2114_p13), %s592_s6, 32  }
  0x86   : > { %1911 = vsyncadd (%p2114_p13), %s592_s6, 4294967264  ;;  %p2432_p3 = scmp.eq.s32.totalorder %s2057_s20, 0 }
  0x88   : > { %1913 = dma.done.wait (%p2432_p3), [#allocation10], 256   ;;  %p2433_p8 = pmov %p2432_p3 }
  0x89   : > { %p2434_p9 = pmov %p2432_p3 }
  0x8a   : > { %1915 = vsyncadd (%p2433_p8), [#allocation10], 4294967040 }
  0x8b   : > { %1917 = dma.done.wait (%p2434_p9), [#allocation13], 512   ;;  %p2435_p12 = pmov %p2432_p3 }
  0x8c   : > { %p2436_p2 = pmov %p2432_p3 }
  0x8d   : > { %1919 = vsyncadd (%p2435_p12), [#allocation13], 4294966784 }
  0x8e   : > { %1921 = dma.done.wait (%p2436_p2), [#allocation16], 512   ;;  %p2437_p4 = pmov %p2436_p2 }
  0x8f   : > { %v1435_v0 = vld [vmem:[#allocation11 + $0x8] sm:$0xff]  ;;  %v1437_v1 = vld [vmem:[#allocation12 + $0x8] sm:$0xff]  ;;  %v1434_v2 = vld [vmem:[#allocation11] sm:$0xff]  ;;  %vm705_vm0 = vcmask 261120   ;;  %vm839_vm1 = vcmask 64512   ;;  %s1951_s1 = smov 112  }
  0x90   : > { %1923 = vsyncadd (%p2437_p4), [#allocation16], 4294966784  ;;  %715 = vmatpush.bf16.msra.mxu0 %v1435_v0  ;;  %751 = vmatpush.bf16.msra.mxu1 %v1437_v1  ;;  %v1436_v3 = vld [vmem:[#allocation12] sm:$0xff]  ;;  %v1441_v4 = vld [vmem:[#allocation15 + $0x8] sm:$0xff]  ;;  %s1952_s15 = smov 104   ;;  %s1953_s29 = smov 120  }
  0x91   : > { %824 = vmatpush.bf16.msra.mxu3 %v1441_v4  ;;  %v682_v5 = vld [vmem:[%s565_s28] sm:$0xf]  ;;  %v683_v6 = vld [vmem:[%s575_s17] sm:$0xf]  ;;  %v1565_v8 = vld [vmem:[%s2378_s5] ss:$0 sm:$0xff] }
  0x92   : > { %v1440_v7 = vld [vmem:[#allocation15] sm:$0xff]  ;;  %v1566_v9 = vld [vmem:[%s2380_s7] ss:$0 sm:$0xff]  ;;  %v1439_v25 = vld [vmem:[#allocation14 + $0x8] sm:$0xff]  ;;  %v1954_v39 = vmov 0.0   ;;  %vm874_vm3 = vcmask 1043456  }
  0x93   : > { %787 = vmatpush.bf16.msra.mxu2 %v1439_v25  ;;  %v1438_v26 = vld [vmem:[#allocation14] sm:$0xff]  ;;  %v684_v27 = vld [vmem:[%s585_s23] sm:$0xf]  ;;  %v835_v35 = vld [vmem:[%s2254_s11] sm:$0x3]  ;;  %s2438_s4 = sld [smem:[#allocation37_spill]] }
  0x94   : > { %716 = vmatpush.bf16.msra.mxu0 %v1434_v2  ;;  %752 = vmatpush.bf16.msra.mxu1 %v1436_v3  ;;  %v836_v36 = vunpack.c.0.s8 %v835_v35  ;;  %v1568_v47 = vld [vmem:[%s2382_s9] ss:$0 sm:$0xff]  ;;  %s1955_s22 = smov 8   ;;  %s1956_s28 = smov 24   ;;  %vm1104_vm4 = vcmask 130048   ;;  %vm1107_vm5 = vcmask 195584  }
  0x95   : > { %825 = vmatpush.bf16.msra.mxu3 %v1440_v7  ;;  %s1957_s21 = smov 16   ;;  %vm1111_vm6 = vcmask 257024   ;;  %s1431_s25 = sshll.u32 %s2057_s20, 3 }
  0x96   : > { %vm837_vm2 = vcmp.eq.s32.totalorder %v836_v36, 0  ;;  %s1376_s17 = sshll.u32 %s2235_s24, 3  ;;  %s2439_s6 = sld [smem:[#allocation40_spill]] }
  0x97   : > { %1385 = vmatmul.msk.bf16.vlgmr.msra.gmra.mxu0 %vm705_vm0, %v682_v5  ;;  %1394 = vmatmul.msk.bf16.vlgmr.msra.gmra.mxu1 %vm705_vm0, %v683_v6  ;;  %v838_v40 = vsel %vm837_vm2, -1e+30, %v1954_v39  ;;  %s2441_s13 = sld [smem:[#allocation39_spill]]  ;;  %s1152_s20 = scalar_lea.sflag [#allocation5], %s2235_s24 }
  0x98   : > { %788 = vmatpush.bf16.msra.mxu2 %v1438_v26 }
  0x9b   : > { %1403 = vmatmul.msk.bf16.vlgmr.msra.gmra.mxu2 %vm705_vm0, %v684_v27 }
  0x9c   : > { %s1162_s18 = scalar_lea.hbm %s2439_s6, %s1431_s25 }
 0x114   : > { %v718_v10 = vpop.f32.mrf.mxu0  ;;  %v754_v11 = vpop.f32.mrf.mxu1 }
 0x115   : > { %v719_v12 = vadd.f32 %v1565_v8, %v718_v10  ;;  %v755_v13 = vadd.f32 %v1566_v9, %v754_v11  ;;  %v1567_v8 = vld [vmem:[%s2438_s4] ss:$0 sm:$0xff]  ;;  %s1876_s4 = scalar_lea.hbm %s2439_s6, 16 }
 0x117   : > { %v794_v14 = vpack.c.bf16 %v719_v12, %v719_v12  ;;  %v831_v15 = vmul.f32 0.35355338, %v719_v12  ;;  %v833_v16 = vpack.c.bf16 %v755_v13, %v755_v13 }
 0x119   : > { %v832_v17 = vpack.c.bf16 %v831_v15, %v831_v15  ;;  %v899_v18 = vunpack.c.l.b16 %v833_v16  ;;  %1412 = vmatmul.msk.bf16.vlgmr.msra.gmra.mxu3 %vm705_vm0, %v794_v14  ;;  %v844_v19 = vsel %vm839_vm1, %v833_v16, 0 }
 0x11a   : > { %853 = vmatpush.bf16.xpose.msrb.mxu0 %v844_v19 }
 0x11b   : > { %v900_v20 = vpack.c.b16 %v899_v18, %v899_v18  ;;  %v894_v23 = vunpack.c.l.b16 %v832_v17 }
 0x11c   : > { %v720_v21 = vpop.f32.mrf.mxu0  ;;  %v756_v22 = vpop.f32.mrf.mxu1 }
 0x11d   : > { %966 = vrot.lane.b32.xlu2 %v900_v20, %s1951_s1  ;;  %1027 = vrot.lane.b32.xlu1 %v900_v20, %s1952_s15  ;;  %v895_v24 = vpack.c.b16 %v894_v23, %v894_v23 }
 0x11e   : > { %901 = vrot.lane.b32.xlu0 %v900_v20, %s1953_s29  ;;  %v790_v48 = vpop.f32.mrf.mxu2 }
 0x11f   : > { %v791_v49 = vadd.f32 %v1568_v47, %v790_v48 }
 0x121   : > { %1413 = vmatmul.msk.bf16.vlgmr.msrb.gmra.mxu0 %vm839_vm1, %v832_v17  ;;  %v834_v50 = vpack.c.bf16 %v791_v49, %v791_v49 }
 0x123   : > { %v876_v51 = vsel %vm874_vm3, %v834_v50, 0  ;;  %v935_v6 = vunpack.c.l.b16 %v834_v50 }
 0x124   : > { %885 = vmatpush.bf16.msrb.mxu1 %v876_v51 }
 0x125   : > { %964 = vrot.lane.b32.xlu2 %v895_v24, %s1951_s1  ;;  %1025 = vrot.lane.b32.xlu1 %v895_v24, %s1952_s15  ;;  %v936_v7 = vpack.c.b16 %v935_v6, %v935_v6  ;;  %v1443_v6 = vld [vmem:[#allocation17 + $0x8] sm:$0xff] }
 0x126   : > { %896 = vrot.lane.b32.xlu0 %v895_v24, %s1953_s29  ;;  %v792_v52 = vpop.f32.mrf.mxu2 }
 0x177   : > { %v967_v28 = vpop.permute.xlu2 %966 }
 0x178   : > { %v972_v29 = vsel %vm839_vm1, %v967_v28, 0 }
 0x179   : > { %981 = vmatpush.bf16.xpose.msra.mxu0 %v972_v29 }
 0x17f   : > { %v965_v30 = vpop.permute.xlu2 %964 }
 0x180   : > { %1417 = vmatmul.msk.bf16.vlgmr.msra.gmra.mxu0 %vm839_vm1, %v965_v30 }
 0x181   : > { %1143 = vmatpush.bf16.msrb.mxu0 %v1443_v6 }
 0x18f   : > { %v1028_v31 = vpop.permute.xlu1 %1027 }
 0x190   : > { %v1033_v32 = vsel %vm839_vm1, %v1028_v31, 0  ;;  %v902_v33 = vpop.permute.xlu0 %901 }
 0x191   : > { %v907_v34 = vsel %vm839_vm1, %v902_v33, 0 }
 0x192   : > { %916 = vmatpush.bf16.xpose.msrb.mxu2 %v907_v34 }
 0x197   : > { %v1026_v46 = vpop.permute.xlu1 %1025 }
 0x198   : > { %v897_v37 = vpop.permute.xlu0 %896 }
 0x199   : > { %1415 = vmatmul.msk.bf16.vlgmr.msrb.gmra.mxu2 %vm839_vm1, %v897_v37 }
 0x19a   : > { %1042 = vmatpush.bf16.xpose.msra.mxu2 %v1033_v32 }
 0x19c   : > { %v827_v38 = vpop.f32.mrf.mxu3 }
 0x19d   : > { %v2312_v9 = vadd.f32 %v1567_v8, %v827_v38 }
 0x19e   : > { %v855_v41 = vpop.f32.mrf.mxu0 }
 0x19f   : > { %v856_v42 = vadd.f32 %v855_v41, %v838_v40 }
 0x1a1   : > { %v859_v43 = vsel %vm839_vm1, %v856_v42, -inf }
 0x1a2   : > { %860 = vmax.xlane.f32.xlu1 %v859_v43 }
 0x1a4   : > { %v829_v44 = vpop.f32.mrf.mxu3 }
 0x1a6   : > { %v857_v45 = vpop.f32.mrf.mxu0 }
 0x1a9   : > { %1419 = vmatmul.msk.bf16.vlgmr.msra.gmra.mxu2 %vm839_vm1, %v1026_v46 }
 0x1fd   : > { %v983_v53 = vpop.f32.mrf.mxu0 }
 0x1fe   : > { %v984_v3 = vadd.f32 %v983_v53, %v838_v40 }
 0x200   : > { %v987_v5 = vsel %vm839_vm1, %v984_v3, -inf }
 0x205   : > { %v985_v54 = vpop.f32.mrf.mxu0 }
 0x215   : > { %v861_v55 = vpop.xlane.xlu1 %860 }
 0x216   : > { %v862_v56 = vsub.f32 %v856_v42, %v861_v55 }
 0x218   : > { %v863_v57 = vmul.f32 1.442695, %v862_v56 }
 0x21a   : > { %1570 = vpow2.f32 %v863_v57 }
 0x21c   : > { %v918_v58 = vpop.f32.mrf.mxu2 }
 0x21d   : > { %v919_v59 = vadd.f32 %v918_v58, %v838_v40 }
 0x21f   : > { %v922_v60 = vsel %vm839_vm1, %v919_v59, -inf }
 0x220   : > { %v1571_v61 = vpop.eup %1570  ;;  %923 = vmax.xlane.f32.xlu0 %v922_v60 }
 0x221   : > { %v865_v62 = vsel %vm839_vm1, %v1571_v61, 0.0 }
 0x222   : > { %866 = vadd.xlane.f32.xlu1 %v865_v62 }
 0x224   : > { %v920_v63 = vpop.f32.mrf.mxu2 }
 0x22c   : > { %v1044_v0 = vpop.f32.mrf.mxu2 }
 0x22d   : > { %v1045_v1 = vadd.f32 %v1044_v0, %v838_v40 }
 0x22f   : > { %v1048_v2 = vsel %vm839_vm1, %v1045_v1, -inf }
 0x230   : > { %1049 = vmax.xlane.f32.xlu2 %v1048_v2 }
 0x234   : > { %v1046_v4 = vpop.f32.mrf.mxu2 }
 0x238   : > { %988 = vmax.xlane.f32.xlu2 %v987_v5 }
 0x250   : > { %937 = vrot.lane.b32.xlu2 %v936_v7, %s1953_s29 }
 0x258   : > { %959 = vrot.lane.b32.xlu2 %v2312_v9, %s1953_s29  ;;  %s1166_s29 = sshll.u32 %s1162_s18, 4  ;;  %s1167_s29 = int_to_ptr.hbm [resolvable:$true] %s1166_s29 }
 0x259   : > { %s1870_s14 = sshra.s32 %s1167_s29, 4  ;;  %s1871_s14 = int_to_ptr.hbm [resolvable:$true] %s1870_s14 }
 0x25a   : > { %s1872_s27 = scalar_lea.hbm %s1871_s14, 8  ;;  %p1877_p10 = scmp.lt.s32.totalorder %s1871_s14, %s2439_s6 }
 0x25b   : > { %p1873_p13 = scmp.ne.s32.totalorder %s1871_s14, %s1872_s27  ;;  %p1878_p6 = scmp.lt.s32.totalorder %s1876_s4, %s1872_s27 }
 0x25d   : > { %p1874_p1 = pnand %p1873_p13, %p2118_p0  ;;  %p1879_p11 = por %p1878_p6, %p1877_p10 }
 0x25f   : > { %p1875_p7 = pneg %p1874_p1 }
 0x260   : > { %1081 = vrot.lane.b32.xlu2 %v2312_v9, %s1952_s15 }
 0x261   : > { %p1880_p3 = pnand %p1879_p11, %p1875_p7 }
 0x293   : > { %v924_v10 = vpop.xlane.xlu0 %923 }
 0x294   : > { %v925_v11 = vsub.f32 %v919_v59, %v924_v10 }
 0x295   : > { %v867_v12 = vpop.xlane.xlu1 %866 }
 0x296   : > { %v926_v13 = vmul.f32 1.442695, %v925_v11  ;;  %1572 = vrcp.f32 %v867_v12 }
 0x298   : > { %1574 = vpow2.f32 %v926_v13 }
 0x29c   : > { %v1573_v14 = vpop.eup %1572 }
 0x29d   : > { %v869_v15 = vmul.f32 %v1573_v14, %v1571_v61 }
 0x29e   : > { %v1575_v16 = vpop.eup %1574 }
 0x29f   : > { %v928_v17 = vsel %vm839_vm1, %v1575_v16, 0.0  ;;  %v870_v18 = vpack.c.bf16 %v869_v15, %v869_v15 }
 0x2a0   : > { %929 = vadd.xlane.f32.xlu0 %v928_v17 }
 0x2a1   : > { %1414 = vmatmul.msk.bf16.vlgmr.msrb.gmra.mxu1 %vm839_vm1, %v870_v18 }
 0x2a3   : > { %v1050_v19 = vpop.xlane.xlu2 %1049 }
 0x2a4   : > { %v1051_v20 = vsub.f32 %v1045_v1, %v1050_v19 }
 0x2a6   : > { %v1052_v21 = vmul.f32 1.442695, %v1051_v20 }
 0x2a8   : > { %1576 = vpow2.f32 %v1052_v21 }
 0x2ab   : > { %v989_v22 = vpop.xlane.xlu2 %988 }
 0x2ac   : > { %v990_v23 = vsub.f32 %v984_v3, %v989_v22 }
 0x2ae   : > { %v1577_v24 = vpop.eup %1576  ;;  %v991_v25 = vmul.f32 1.442695, %v990_v23 }
 0x2af   : > { %v1054_v26 = vsel %vm839_vm1, %v1577_v24, 0.0 }
 0x2b0   : > { %1578 = vpow2.f32 %v991_v25  ;;  %1055 = vadd.xlane.f32.xlu0 %v1054_v26 }
 0x2b3   : > { %v938_v27 = vpop.permute.xlu2 %937 }
 0x2b4   : > { %v943_v28 = vsel %vm874_vm3, %v938_v27, 0 }
 0x2b5   : > { %952 = vmatpush.bf16.msrb.mxu3 %v943_v28 }
 0x2b6   : > { %v1579_v29 = vpop.eup %1578 }
 0x2b7   : > { %v993_v30 = vsel %vm839_vm1, %v1579_v29, 0.0 }
 0x2b8   : > { %994 = vadd.xlane.f32.xlu1 %v993_v30 }
 0x2bb   : > { %v960_v49 = vpop.permute.xlu2 %959 }
 0x2c3   : > { %v1082_v56 = vpop.permute.xlu2 %1081 }
 0x2c4   : > { %1060 = vrot.lane.b32.xlu0 %v936_v7, %s1952_s15 }
 0x2cc   : > { %1020 = vrot.lane.b32.xlu0 %v2312_v9, %s1951_s1 }
 0x2d1   : > { %999 = vrot.lane.b32.xlu1 %v936_v7, %s1951_s1  ;;  %v1442_v7 = vld [vmem:[#allocation17] sm:$0xff]  ;;  %s680_s1 = scalar_lea.vmem [#allocation18], %s1376_s17 }
 0x2d2   : > { %1144 = vmatpush.bf16.msrb.mxu0 %v1442_v7  ;;  %s1164_s15 = sshll.u32 %s680_s1, 4  ;;  %s1165_s15 = int_to_ptr.vmem [resolvable:$true] %s1164_s15 }
 0x313   : > { %v930_v31 = vpop.xlane.xlu0 %929 }
 0x314   : > { %1580 = vrcp.f32 %v930_v31 }
 0x31a   : > { %v1581_v32 = vpop.eup %1580 }
 0x31b   : > { %v932_v33 = vmul.f32 %v1581_v32, %v1575_v16 }
 0x31d   : > { %v933_v34 = vpack.c.bf16 %v932_v33, %v932_v33 }
 0x31e   : > { %v887_v35 = vpop.f32.mrf.mxu1 }
 0x31f   : > { %1416 = vmatmul.msk.bf16.vlgmr.msrb.gmra.mxu3 %vm839_vm1, %v933_v34  ;;  %v891_v8 = vmul.f32 %v887_v35, %v2312_v9  ;;  %v1569_v9 = vld [vmem:[%s2441_s13] ss:$0 sm:$0xff] }
 0x321   : > { %v892_v11 = vpack.c.bf16 %v891_v8, %v891_v8 }
 0x323   : > { %v1056_v37 = vpop.xlane.xlu0 %1055 }
 0x324   : > { %1582 = vrcp.f32 %v1056_v37 }
 0x326   : > { %v889_v36 = vpop.f32.mrf.mxu1 }
 0x32a   : > { %v1583_v38 = vpop.eup %1582 }
 0x32b   : > { %v1058_v39 = vmul.f32 %v1583_v38, %v1577_v24  ;;  %v995_v40 = vpop.xlane.xlu1 %994 }
 0x32c   : > { %1584 = vrcp.f32 %v995_v40 }
 0x32d   : > { %v1059_v43 = vpack.c.bf16 %v1058_v39, %v1058_v39 }
 0x332   : > { %v1585_v44 = vpop.eup %1584 }
 0x333   : > { %v997_v45 = vmul.f32 %v1585_v44, %v1579_v29 }
 0x335   : > { %v998_v48 = vpack.c.bf16 %v997_v45, %v997_v45 }
 0x336   : > { %v1061_v41 = vpop.permute.xlu0 %1060 }
 0x337   : > { %v1066_v42 = vsel %vm874_vm3, %v1061_v41, 0 }
 0x338   : > { %1075 = vmatpush.bf16.msra.mxu3 %v1066_v42 }
 0x33b   : > { %1420 = vmatmul.msk.bf16.vlgmr.msra.gmra.mxu3 %vm839_vm1, %v1059_v43 }
 0x33e   : > { %v1021_v61 = vpop.permute.xlu0 %1020 }
 0x343   : > { %v1000_v46 = vpop.permute.xlu1 %999 }
 0x344   : > { %v1005_v47 = vsel %vm874_vm3, %v1000_v46, 0 }
 0x345   : > { %1014 = vmatpush.bf16.msra.mxu1 %v1005_v47 }
 0x348   : > { %1418 = vmatmul.msk.bf16.vlgmr.msra.gmra.mxu1 %vm839_vm1, %v998_v48 }
 0x3a2   : > { %v954_v50 = vpop.f32.mrf.mxu3 }
 0x3a3   : > { %v962_v51 = vmul.f32 %v960_v49, %v954_v50 }
 0x3a5   : > { %v963_v52 = vpack.c.bf16 %v962_v51, %v962_v51 }
 0x3a7   : > { %v1087_v53 = vunpack.c.l.b16 %v963_v52 }
 0x3a9   : > { %v1088_v54 = vpack.c.b16 %v1087_v53, %v1087_v53 }
 0x3aa   : > { %v956_v55 = vpop.f32.mrf.mxu3 }
 0x3ab   : > { %1089 = vrot.lane.b32.xlu1 %v1088_v54, %s1955_s22 }
 0x3be   : > { %v1077_v57 = vpop.f32.mrf.mxu3 }
 0x3bf   : > { %v1084_v58 = vmul.f32 %v1082_v56, %v1077_v57 }
 0x3c1   : > { %v1085_v59 = vpack.c.bf16 %v1084_v58, %v1084_v58 }
 0x3c3   : > { %v1097_v60 = vunpack.c.l.b16 %v1085_v59 }
 0x3c5   : > { %v1098_v62 = vpack.c.b16 %v1097_v60, %v1097_v60  ;;  %v1016_v63 = vpop.f32.mrf.mxu1 }
 0x3c6   : > { %v1023_v0 = vmul.f32 %v1021_v61, %v1016_v63  ;;  %v1079_v1 = vpop.f32.mrf.mxu3 }
 0x3c7   : > { %1099 = vrot.lane.b32.xlu2 %v1098_v62, %s1956_s28 }
 0x3c8   : > { %v1024_v2 = vpack.c.bf16 %v1023_v0, %v1023_v0 }
 0x3ca   : > { %v1092_v3 = vunpack.c.l.b16 %v1024_v2 }
 0x3cc   : > { %v1093_v4 = vpack.c.b16 %v1092_v3, %v1092_v3 }
 0x3cd   : > { %v1018_v5 = vpop.f32.mrf.mxu1 }
 0x3ce   : > { %1094 = vrot.lane.b32.xlu0 %v1093_v4, %s1957_s21 }
 0x41d   : > { %v1090_v10 = vpop.permute.xlu1 %1089 }
 0x41e   : > { %v1103_v12 = vsel %vm839_vm1, %v892_v11, %v1090_v10 }
 0x421   : > { %v1100_v14 = vpop.permute.xlu2 %1099 }
 0x440   : > { %v1095_v13 = vpop.permute.xlu0 %1094 }
 0x441   : > { %v1106_v15 = vsel %vm1104_vm4, %v1103_v12, %v1095_v13 }
 0x442   : > { %v1109_v16 = vsel %vm1107_vm5, %v1106_v15, %v1100_v14 }
 0x443   : > { %1112 = vst.msk [vmem:[#allocation2] sm:$0xf] %vm1111_vm6, %v1109_v16 }
 0x44a   : > { %v1113_v17 = vld [vmem:[#allocation2] sm:$0xf] }
 0x44b   : > { %1429 = vmatmul.msk.bf16.vlgmr.msrb.gmra.mxu0 %vm705_vm0, %v1113_v17 }
 0x4c8   : > { %v1146_v18 = vpop.f32.mrf.mxu0 }
 0x4c9   : > { %v1147_v19 = vadd.f32 %v1569_v9, %v1146_v18 }
 0x4cb   : > { %1150 = vst.msk [vmem:[%s680_s1] sm:$0xff] %vm705_vm0, %v1147_v19 }
 0x4cc   : > { %1883 = shalt.err (!%p1880_p3)
}
 0x4cd   : > { %1472 = dma.vmem_to_hbm [thread:$0]  (%p2118_p0), %s1165_s15, 128, %s1167_s29, %s1152_s20  }
 0x4d0   : > { %v1148_v20 = vpop.f32.mrf.mxu0 }
 0x4d1 PF: > { %s2442_s24 = sld [smem:[#allocation26_spill]]  ;;  %p2444_p8 = scmp.ge.s32.totalorder %s1942_s16, 2 }
 0x4d3   : > { %p1504_p9 = pnand %p2444_p8, %p2126_p5 }
 0x4d5   : > { %p1505_p12 = pneg %p1504_p9 }
 0x4d7   : > { %s1178_s25 = sand.u32 1, %s2442_s24  }
 0x4d8   : > { %s1179_s17 = scalar_lea.sflag [#allocation5], %s1178_s25 }
 0x4d9   : > { %1925 = dma.done.wait (%p1505_p12), %s1179_s17, 128  }
 0x4da   : > { %1927 = vsyncadd (%p1505_p12), %s1179_s17, 4294967168  ;;  %s2445_s16 = sld [smem:[#allocation28_spill]]  ;;  %s2448_s29 = smov %s1934_s30 }
 0x4db   : > { %s2446_s26 = sld [smem:[#allocation27_spill]] }
 0x4dc   : > { %s2447_s15 = sld [smem:[#allocation29_spill]] }
 0x4e0   : > { %p35_p2 = scmp.ge.s32.totalorder %s2445_s16, 4  }
 0x4e1   : > { %s2449_s30 = smov %s2446_s26 }
 0x4e2   :  { %37 = sbr.rel (!%p35_p2) target bundleno = 21 (0x15), region = 178 }
 0x4e7   :  { %1185 = vsyncpa [#allocation4], 1 }
 0x4e8   :  { %1187 = vsyncpa [#allocation4 + $0x1], 1 }
 0x4e9   :  { %1188 = vsyncpa [#allocation7], 1 }
 0x4ea   :  { %1190 = vsyncpa [#allocation7 + $0x1], 1 }
 0x4eb   :  { %1191 = vsyncpa [#allocation10], 1 }
 0x4ec   :  { %1193 = vsyncpa [#allocation10 + $0x1], 1 }
 0x4ed   :  { %1194 = vsyncpa [#allocation13], 1 }
 0x4ee   :  { %1195 = vsyncpa [#allocation16], 1 }
 0x4ef   :  { %1196 = vsyncpa [#allocation5], 1 }
 0x4f0   :  { %1198 = vsyncpa [#allocation5 + $0x1], 1 }

</bundles_post_ra>
